<compile_context>
chip_gen: v7x
topology: tpu7x:2x2x1
jax: 0.10.0
libtpu: 0.0.40
codegen_flags: <defaults>
</compile_context>

<pallas_src>
import functools
import math

import jax
import jax.numpy as jnp
from jax.experimental import pallas as pl
from jax.experimental.pallas import tpu as pltpu


def _decoder_fused_kernel(x_ref, wqkv_ref, bqkv_ref, wo_ref, bo_ref, norm_ref,
                          out_ref, x_scr, *, num_heads: int, eps: float):
    l = pl.program_id(0)
    n_layers = pl.num_programs(0)

    B, S, D = x_ref.shape
    H = num_heads
    dk = D // H
    G = 3 * H            # fused q/k/v head groups
    HB = H * B
    f32 = jnp.float32
    bf16 = jnp.bfloat16

    # Load the input activation into the resident VMEM scratch once.
    @pl.when(l == 0)
    def _load_x():
        x_scr[...] = x_ref[...].astype(f32)

    x = x_scr[...]                                   # (B, S, D) f32 residual stream
    xb = x.astype(bf16)

    # ---- fused per-head QKV projection: one leading-batch 3-D MXU matmul ----
    # Weights were relaid out head-major in the wrapper; broadcasting over B
    # keeps every reshape a pure leading-dim merge (no lane/sublane shuffles).
    x_g = jnp.broadcast_to(xb[None], (G, B, S, D)).reshape(G * B, S, D)
    w_g = jnp.broadcast_to(wqkv_ref[...][:, None],
                           (G, B, D, dk)).reshape(G * B, D, dk)
    qkv = jnp.einsum("gsd,gde->gse", x_g, w_g, preferred_element_type=f32)
    b_g = jnp.broadcast_to(bqkv_ref[...][:, None, None, :],
                           (G, B, 1, dk)).reshape(G * B, 1, dk)
    qkv = qkv + b_g                                  # (3*H*B, S, dk) f32

    q = qkv[0 * HB:1 * HB]                           # leading-dim slices (cheap)
    k = qkv[1 * HB:2 * HB]
    v = qkv[2 * HB:3 * HB]                           # each (H*B, S, dk)

    # ---- attention, batched over (head, batch); softmax in f32, exact divide ----
    # TODO(synk): src_mask / tgt_mask / encoder_output are accepted by the
    # wrapper but have no effect (the spec does not define the layer internals).
    s = jnp.einsum("gqd,gkd->gqk", q.astype(bf16), k.astype(bf16),
                   preferred_element_type=f32) * (1.0 / math.sqrt(dk))
    m = jnp.max(s, axis=-1, keepdims=True)
    e = jnp.exp(s - m)
    p = e / jnp.sum(e, axis=-1, keepdims=True)
    o = jnp.einsum("gqk,gkd->gqd", p.astype(bf16), v.astype(bf16),
                   preferred_element_type=f32)       # (H*B, S, dk) f32

    # ---- output projection: per-head matmul + sum over heads ----
    # (identical to concat-heads @ Wo, but avoids the lane-merge relayout)
    wo_g = jnp.broadcast_to(wo_ref[...][:, None],
                            (H, B, dk, D)).reshape(HB, dk, D)
    y_g = jnp.einsum("gsd,gde->gse", o.astype(bf16), wo_g,
                     preferred_element_type=f32)     # (H*B, S, D)
    y = jnp.sum(y_g.reshape(H, B, S, D), axis=0) + bo_ref[...]   # (B, S, D) f32

    x_scr[...] = y                                   # residual stays in VMEM

    # ---- final LayerNormalization fused into the last grid step ----
    @pl.when(l == n_layers - 1)
    def _final_norm():
        mean = jnp.mean(y, axis=-1, keepdims=True)
        # torch.Tensor.std() is unbiased (Bessel correction, /(D-1)).
        var = jnp.sum((y - mean) ** 2, axis=-1, keepdims=True) / (D - 1)
        std = jnp.sqrt(var)
        alpha = norm_ref[0]                          # scalars from SMEM
        beta = norm_ref[1]
        out_ref[...] = (alpha * (y - mean) / (std + eps) + beta
                        ).astype(out_ref.dtype)


def decoder_forward(x, encoder_output, src_mask, tgt_mask,
                    layer_params, norm_params, *, num_heads: int,
                    eps: float = 1e-6):
    """Decoder.forward: x -> layers -> LayerNormalization, one fused pallas_call."""
    # TODO(synk): the spec's `layers` nn.ModuleList internals are not provided;
    # each layer is modeled as one multi-head self-attention block, so
    # encoder_output / src_mask / tgt_mask are accepted but unused.
    del encoder_output, src_mask, tgt_mask

    B, S, D = x.shape
    H = num_heads
    assert D % H == 0
    dk = D // H
    L = len(layer_params)
    assert L >= 1

    # ---- trace-time weight relayout (outside the kernel): head-major stacks ----
    def prep(p):
        # w_qkv columns are [Wq | Wk | Wv], each head-major -> (3H, D, dk)
        wqkv = p["w_qkv"].reshape(D, 3, H, dk).transpose(1, 2, 0, 3)
        wqkv = wqkv.reshape(3 * H, D, dk)
        bqkv = p["b_qkv"].reshape(3, H, dk).reshape(3 * H, dk)
        wo = p["wo"].reshape(H, dk, D)               # rows are head-major
        bo = p["bo"].reshape(1, D)
        return wqkv, bqkv, wo, bo

    stacks = [prep(p) for p in layer_params]
    wqkv_all = jnp.stack([s[0] for s in stacks]).astype(jnp.bfloat16)  # (L,3H,D,dk)
    bqkv_all = jnp.stack([s[1] for s in stacks]).astype(jnp.float32)   # (L,3H,dk)
    wo_all = jnp.stack([s[2] for s in stacks]).astype(jnp.bfloat16)    # (L,H,dk,D)
    bo_all = jnp.stack([s[3] for s in stacks]).astype(jnp.float32)     # (L,1,D)
    norm_sc = jnp.concatenate([
        norm_params["alpha"].reshape(-1)[:1],
        norm_params["bias"].reshape(-1)[:1],
    ]).astype(jnp.float32)                                             # (2,)

    kernel = functools.partial(_decoder_fused_kernel, num_heads=H, eps=eps)

    grid_spec = pltpu.PrefetchScalarGridSpec(
        num_scalar_prefetch=0,
        grid=(L,),
        in_specs=[
            # x: whole array, constant block index -> DMA'd once, stays in VMEM.
            pl.BlockSpec((B, S, D), lambda l: (0, 0, 0)),
            # per-layer weight slabs, pipelined across the layer grid axis.
            pl.BlockSpec((None, 3 * H, D, dk), lambda l: (l, 0, 0, 0)),
            pl.BlockSpec((None, 3 * H, dk), lambda l: (l, 0, 0)),
            pl.BlockSpec((None, H, dk, D), lambda l: (l, 0, 0, 0)),
            pl.BlockSpec((None, 1, D), lambda l: (l, 0, 0)),
            # LayerNorm alpha/bias: scalars on the scalar path (SMEM).
            pl.BlockSpec(memory_space=pltpu.MemorySpace.SMEM),
        ],
        # constant block index -> output resident across layers, flushed at end.
        out_specs=pl.BlockSpec((B, S, D), lambda l: (0, 0, 0)),
        scratch_shapes=[pltpu.VMEM((B, S, D), jnp.float32)],
    )

    return pl.pallas_call(
        kernel,
        out_shape=jax.ShapeDtypeStruct((B, S, D), x.dtype),
        grid_spec=grid_spec,
        compiler_params=pltpu.CompilerParams(
            dimension_semantics=("arbitrary",)),     # layers are sequential
    )(x, wqkv_all, bqkv_all, wo_all, bo_all, norm_sc)


# ----------------------------- pure-JAX reference -----------------------------

def _ref_layer(x, p, num_heads):
    B, S, D = x.shape
    dk = D // num_heads
    qkv = x.reshape(B * S, D) @ p["w_qkv"] + p["b_qkv"]
    q, k, v = qkv[:, :D], qkv[:, D:2 * D], qkv[:, 2 * D:]

    def heads(t):
        return t.reshape(B, S, num_heads, dk).transpose(0, 2, 1, 3)  # (B,H,S,dk)

    Q, K, V = heads(q), heads(k), heads(v)
    s = jnp.einsum("bhqd,bhkd->bhqk", Q, K) / math.sqrt(dk)
    pa = jax.nn.softmax(s, axis=-1)
    o = jnp.einsum("bhqk,bhkd->bhqd", pa, V)
    o = o.transpose(0, 2, 1, 3).reshape(B * S, D)
    y = o @ p["wo"] + p["bo"]
    return y.reshape(B, S, D)


def _ref_decoder(x, layer_params, norm_params, num_heads, eps=1e-6):
    for p in layer_params:
        x = _ref_layer(x, p, num_heads)
    mean = x.mean(axis=-1, keepdims=True)
    std = jnp.std(x, axis=-1, keepdims=True, ddof=1)
    return norm_params["alpha"] * (x - mean) / (std + eps) + norm_params["bias"]


# --------------------------------- test setup ---------------------------------

def _init_layer_params(key, d_model):
    bound = 1.0 / math.sqrt(d_model)
    ks = jax.random.split(key, 4)

    def u(k, shape):
        return jax.random.uniform(k, shape, jnp.float32, -bound, bound)

    return {
        # stored as (in, out) == W^T so y = x @ w + b; columns = [Wq | Wk | Wv]
        "w_qkv": u(ks[0], (d_model, 3 * d_model)),
        "b_qkv": u(ks[1], (1, 3 * d_model)),
        "wo":    u(ks[2], (d_model, d_model)),
        "bo":    u(ks[3], (1, d_model)),
    }


if __name__ == "__main__":
    B, S, D, H, L = 2, 8, 32, 4, 2  # batch, seq, d_model, heads, decoder layers

    root = jax.random.PRNGKey(0)
    kx, kenc, *klayers = jax.random.split(root, 2 + L)

    x = jax.random.normal(kx, (B, S, D), jnp.float32)
    encoder_output = jax.random.normal(kenc, (B, S, D), jnp.float32)
    src_mask = jnp.ones((B, 1, S, S), jnp.float32)  # accepted, no effect (see TODO)
    tgt_mask = jnp.ones((B, 1, S, S), jnp.float32)  # accepted, no effect (see TODO)

    layer_params = [_init_layer_params(k, D) for k in klayers]
    norm_params = {  # matches PyTorch init: alpha = ones(1), bias = zeros(1)
        "alpha": jnp.ones((1,), jnp.float32),
        "bias":  jnp.zeros((1,), jnp.float32),
    }

    out = decoder_forward(x, encoder_output, src_mask, tgt_mask,
                          layer_params, norm_params, num_heads=H)
    out = jax.block_until_ready(out)

    ref = _ref_decoder(x, layer_params, norm_params, H)
    assert out.shape == (B, S, D)
    # Softmax / LayerNorm use exact f32 divides; the only deviation from the
    # f32 reference is the bf16 cast of MXU operands requested by the review.
    assert jnp.allclose(out, ref, atol=2e-2, rtol=2e-2), "mismatch vs reference"

    print("KERNEL_OK")
</pallas_src>

<mosaic_0001>
module attributes {stable_mosaic.version = 11 : i64} {
  func.func @_decoder_fused_kernel(%arg0: i32, %arg1: memref<2x8x32xf32, #tpu.memory_space<vmem>>, %arg2: memref<1x12x32x8xbf16, #tpu.memory_space<vmem>>, %arg3: memref<1x12x8xf32, #tpu.memory_space<vmem>>, %arg4: memref<1x4x8x32xbf16, #tpu.memory_space<vmem>>, %arg5: memref<1x1x32xf32, #tpu.memory_space<vmem>>, %arg6: memref<2xf32, #tpu.memory_space<smem>>, %arg7: memref<2x8x32xf32, #tpu.memory_space<vmem>>, %arg8: memref<2x8x32xf32, #tpu.memory_space<vmem>>) attributes {dimension_semantics = [#tpu.dimension_semantics<arbitrary>], iteration_bounds = array<i64: 2>, scalar_prefetch = 0 : i64, scratch_operands = 1 : i64, tpu.core_type = #tpu.core_type<tc>, window_params = [{pipeline_mode = #tpu.pipeline_mode<synchronous>, transform_indices = @transform_0, window_bounds = array<i64: 2, 8, 32>}, {transform_indices = @transform_1, window_bounds = array<i64: 1, 12, 32, 8>}, {transform_indices = @transform_2, window_bounds = array<i64: 1, 12, 8>}, {transform_indices = @transform_3, window_bounds = array<i64: 1, 4, 8, 32>}, {transform_indices = @transform_4, window_bounds = array<i64: 1, 1, 32>}, {transform_indices = @transform_5, window_bounds = array<i64: 2>}, {pipeline_mode = #tpu.pipeline_mode<synchronous>, transform_indices = @transform_6, window_bounds = array<i64: 2, 8, 32>}]} {
    %c0_i32 = arith.constant 0 : i32
    %0 = arith.cmpi eq, %arg0, %c0_i32 : i32
    %1 = arith.extui %0 : i1 to i32
    %c0_i32_0 = arith.constant 0 : i32
    %2 = arith.cmpi ne, %1, %c0_i32_0 : i32
    scf.if %2 {
      %c0_28 = arith.constant 0 : index
      %c0_29 = arith.constant 0 : index
      %c0_30 = arith.constant 0 : index
      %63 = vector.load %arg1[%c0_28, %c0_29, %c0_30] : memref<2x8x32xf32, #tpu.memory_space<vmem>>, vector<2x8x32xf32>
      %c0_31 = arith.constant 0 : index
      %c0_32 = arith.constant 0 : index
      %c0_33 = arith.constant 0 : index
      %64 = vector.load %arg8[%c0_31, %c0_32, %c0_33] : memref<2x8x32xf32, #tpu.memory_space<vmem>>, vector<2x8x32xf32>
      tpu.vector_store %arg8[%c0_31, %c0_32, %c0_33], %63 {strides = array<i32>} : memref<2x8x32xf32, #tpu.memory_space<vmem>>, vector<2x8x32xf32>,
    } else {
    }
    %c0 = arith.constant 0 : index
    %c0_1 = arith.constant 0 : index
    %c0_2 = arith.constant 0 : index
    %3 = vector.load %arg8[%c0, %c0_1, %c0_2] : memref<2x8x32xf32, #tpu.memory_space<vmem>>, vector<2x8x32xf32>
    %4 = arith.truncf %3 : vector<2x8x32xf32> to vector<2x8x32xbf16>
    %5 = vector.shape_cast %4 : vector<2x8x32xbf16> to vector<1x2x8x32xbf16>
    %6 = vector.shape_cast %5 : vector<1x2x8x32xbf16> to vector<1x2x8x32xbf16>
    %7 = vector.broadcast %6 : vector<1x2x8x32xbf16> to vector<12x2x8x32xbf16>
    %8 = vector.shape_cast %7 : vector<12x2x8x32xbf16> to vector<24x8x32xbf16>
    %c0_3 = arith.constant 0 : index
    %c0_4 = arith.constant 0 : index
    %c0_5 = arith.constant 0 : index
    %c0_6 = arith.constant 0 : index
    %9 = vector.load %arg2[%c0_3, %c0_4, %c0_5, %c0_6] : memref<1x12x32x8xbf16, #tpu.memory_space<vmem>>, vector<1x12x32x8xbf16>
    %10 = vector.shape_cast %9 : vector<1x12x32x8xbf16> to vector<12x32x8xbf16>
    %11 = vector.shape_cast %10 : vector<12x32x8xbf16> to vector<12x1x32x8xbf16>
    %12 = vector.shape_cast %11 : vector<12x1x32x8xbf16> to vector<12x1x32x8xbf16>
    %13 = vector.broadcast %12 : vector<12x1x32x8xbf16> to vector<12x2x32x8xbf16>
    %14 = vector.shape_cast %13 : vector<12x2x32x8xbf16> to vector<24x32x8xbf16>
    "tpu.trace_start"() <{level = 10 : i32, message = "gsd,gde->gse"}> : () -> ()
    %cst = arith.constant dense<0.000000e+00> : vector<24x8x8xf32>
    %15 = tpu.matmul %8, %14, %cst {dimension_numbers = #tpu.dot_dimension_numbers<[2], [1], [1], [2], [0, 0, 0, 1, 1, 2], [0], [0]>} : vector<24x8x32xbf16>, vector<24x32x8xbf16>, vector<24x8x8xf32> -> vector<24x8x8xf32>
    "tpu.trace_stop"() : () -> ()
    %c0_7 = arith.constant 0 : index
    %c0_8 = arith.constant 0 : index
    %c0_9 = arith.constant 0 : index
    %16 = vector.load %arg3[%c0_7, %c0_8, %c0_9] : memref<1x12x8xf32, #tpu.memory_space<vmem>>, vector<1x12x8xf32>
    %17 = vector.shape_cast %16 : vector<1x12x8xf32> to vector<12x8xf32>
    %18 = vector.shape_cast %17 : vector<12x8xf32> to vector<12x1x1x8xf32>
    %19 = vector.shape_cast %18 : vector<12x1x1x8xf32> to vector<12x1x1x8xf32>
    %20 = vector.broadcast %19 : vector<12x1x1x8xf32> to vector<12x2x1x8xf32>
    %21 = vector.shape_cast %20 : vector<12x2x1x8xf32> to vector<24x1x8xf32>
    %22 = vector.broadcast %21 : vector<24x1x8xf32> to vector<24x8x8xf32>
    %23 = arith.addf %15, %22 : vector<24x8x8xf32>
    %24 = vector.extract_strided_slice %23 {offsets = [0, 0, 0], sizes = [8, 8, 8], strides = [1, 1, 1]} : vector<24x8x8xf32> to vector<8x8x8xf32>
    %25 = vector.extract_strided_slice %23 {offsets = [8, 0, 0], sizes = [8, 8, 8], strides = [1, 1, 1]} : vector<24x8x8xf32> to vector<8x8x8xf32>
    %26 = vector.extract_strided_slice %23 {offsets = [16, 0, 0], sizes = [8, 8, 8], strides = [1, 1, 1]} : vector<24x8x8xf32> to vector<8x8x8xf32>
    %27 = arith.truncf %24 : vector<8x8x8xf32> to vector<8x8x8xbf16>
    %28 = arith.truncf %25 : vector<8x8x8xf32> to vector<8x8x8xbf16>
    "tpu.trace_start"() <{level = 10 : i32, message = "gqd,gkd->gqk"}> : () -> ()
    %cst_10 = arith.constant dense<0.000000e+00> : vector<8x8x8xf32>
    %29 = tpu.matmul %27, %28, %cst_10 {dimension_numbers = #tpu.dot_dimension_numbers<[2], [2], [1], [1], [0, 0, 0, 1, 1, 1], [0], [0]>} : vector<8x8x8xbf16>, vector<8x8x8xbf16>, vector<8x8x8xf32> -> vector<8x8x8xf32>
    "tpu.trace_stop"() : () -> ()
    %cst_11 = arith.constant 0.353553385 : f32
    %30 = vector.broadcast %cst_11 : f32 to vector<8x8x8xf32>
    %31 = arith.mulf %29, %30 : vector<8x8x8xf32>
    %cst_12 = arith.constant dense<0xFF800000> : vector<8x8xf32>
    %32 = vector.multi_reduction <maximumf>, %31, %cst_12 [2] : vector<8x8x8xf32> to vector<8x8xf32>
    %33 = vector.shape_cast %32 : vector<8x8xf32> to vector<8x8x1xf32>
    %34 = vector.broadcast %33 : vector<8x8x1xf32> to vector<8x8x8xf32>
    %35 = arith.subf %31, %34 : vector<8x8x8xf32>
    %36 = math.exp %35 : vector<8x8x8xf32>
    %cst_13 = arith.constant dense<0.000000e+00> : vector<8x8xf32>
    %37 = vector.multi_reduction <add>, %36, %cst_13 [2] : vector<8x8x8xf32> to vector<8x8xf32>
    %38 = vector.shape_cast %37 : vector<8x8xf32> to vector<8x8x1xf32>
    %39 = vector.broadcast %38 : vector<8x8x1xf32> to vector<8x8x8xf32>
    %40 = arith.divf %36, %39 : vector<8x8x8xf32>
    %41 = arith.truncf %40 : vector<8x8x8xf32> to vector<8x8x8xbf16>
    %42 = arith.truncf %26 : vector<8x8x8xf32> to vector<8x8x8xbf16>
    "tpu.trace_start"() <{level = 10 : i32, message = "gqk,gkd->gqd"}> : () -> ()
    %cst_14 = arith.constant dense<0.000000e+00> : vector<8x8x8xf32>
    %43 = tpu.matmul %41, %42, %cst_14 {dimension_numbers = #tpu.dot_dimension_numbers<[2], [1], [1], [2], [0, 0, 0, 1, 1, 2], [0], [0]>} : vector<8x8x8xbf16>, vector<8x8x8xbf16>, vector<8x8x8xf32> -> vector<8x8x8xf32>
    "tpu.trace_stop"() : () -> ()
    %c0_15 = arith.constant 0 : index
    %c0_16 = arith.constant 0 : index
    %c0_17 = arith.constant 0 : index
    %c0_18 = arith.constant 0 : index
    %44 = vector.load %arg4[%c0_15, %c0_16, %c0_17, %c0_18] : memref<1x4x8x32xbf16, #tpu.memory_space<vmem>>, vector<1x4x8x32xbf16>
    %45 = vector.shape_cast %44 : vector<1x4x8x32xbf16> to vector<4x8x32xbf16>
    %46 = vector.shape_cast %45 : vector<4x8x32xbf16> to vector<4x1x8x32xbf16>
    %47 = vector.shape_cast %46 : vector<4x1x8x32xbf16> to vector<4x1x8x32xbf16>
    %48 = vector.broadcast %47 : vector<4x1x8x32xbf16> to vector<4x2x8x32xbf16>
    %49 = vector.shape_cast %48 : vector<4x2x8x32xbf16> to vector<8x8x32xbf16>
    %50 = arith.truncf %43 : vector<8x8x8xf32> to vector<8x8x8xbf16>
    "tpu.trace_start"() <{level = 10 : i32, message = "gsd,gde->gse"}> : () -> ()
    %cst_19 = arith.constant dense<0.000000e+00> : vector<8x8x32xf32>
    %51 = tpu.matmul %50, %49, %cst_19 {dimension_numbers = #tpu.dot_dimension_numbers<[2], [1], [1], [2], [0, 0, 0, 1, 1, 2], [0], [0]>} : vector<8x8x8xbf16>, vector<8x8x32xbf16>, vector<8x8x32xf32> -> vector<8x8x32xf32>
    "tpu.trace_stop"() : () -> ()
    %52 = vector.shape_cast %51 : vector<8x8x32xf32> to vector<4x2x8x32xf32>
    %cst_20 = arith.constant dense<0.000000e+00> : vector<2x8x32xf32>
    %53 = vector.multi_reduction <add>, %52, %cst_20 [0] : vector<4x2x8x32xf32> to vector<2x8x32xf32>
    %c0_21 = arith.constant 0 : index
    %c0_22 = arith.constant 0 : index
    %c0_23 = arith.constant 0 : index
    %54 = vector.load %arg5[%c0_21, %c0_22, %c0_23] : memref<1x1x32xf32, #tpu.memory_space<vmem>>, vector<1x1x32xf32>
    %55 = vector.shape_cast %54 : vector<1x1x32xf32> to vector<1x32xf32>
    %56 = vector.shape_cast %55 : vector<1x32xf32> to vector<1x1x32xf32>
    %57 = vector.broadcast %56 : vector<1x1x32xf32> to vector<2x8x32xf32>
    %58 = arith.addf %53, %57 : vector<2x8x32xf32>
    %c0_24 = arith.constant 0 : index
    %c0_25 = arith.constant 0 : index
    %c0_26 = arith.constant 0 : index
    %59 = vector.load %arg8[%c0_24, %c0_25, %c0_26] : memref<2x8x32xf32, #tpu.memory_space<vmem>>, vector<2x8x32xf32>
    tpu.vector_store %arg8[%c0_24, %c0_25, %c0_26], %58 {strides = array<i32>} : memref<2x8x32xf32, #tpu.memory_space<vmem>>, vector<2x8x32xf32>,
    %c1_i32 = arith.constant 1 : i32
    %60 = arith.cmpi eq, %arg0, %c1_i32 : i32
    %61 = arith.extui %60 : i1 to i32
    %c0_i32_27 = arith.constant 0 : i32
    %62 = arith.cmpi ne, %61, %c0_i32_27 : i32
    scf.if %62 {
      %cst_28 = arith.constant dense<0.000000e+00> : vector<2x8xf32>
      %63 = vector.multi_reduction <add>, %58, %cst_28 [2] : vector<2x8x32xf32> to vector<2x8xf32>
      %64 = vector.shape_cast %63 : vector<2x8xf32> to vector<2x8x1xf32>
      %cst_29 = arith.constant 3.200000e+01 : f32
      %65 = vector.broadcast %cst_29 : f32 to vector<2x8x1xf32>
      %66 = arith.divf %64, %65 : vector<2x8x1xf32>
      %67 = vector.broadcast %66 : vector<2x8x1xf32> to vector<2x8x32xf32>
      %68 = arith.subf %58, %67 : vector<2x8x32xf32>
      %69 = arith.mulf %68, %68 : vector<2x8x32xf32>
      %cst_30 = arith.constant dense<0.000000e+00> : vector<2x8xf32>
      %70 = vector.multi_reduction <add>, %69, %cst_30 [2] : vector<2x8x32xf32> to vector<2x8xf32>
      %71 = vector.shape_cast %70 : vector<2x8xf32> to vector<2x8x1xf32>
      %cst_31 = arith.constant 3.100000e+01 : f32
      %72 = vector.broadcast %cst_31 : f32 to vector<2x8x1xf32>
      %73 = arith.divf %71, %72 : vector<2x8x1xf32>
      %74 = math.sqrt %73 : vector<2x8x1xf32>
      %c0_32 = arith.constant 0 : index
      %75 = memref.load %arg6[%c0_32] : memref<2xf32, #tpu.memory_space<smem>>
      %c1 = arith.constant 1 : index
      %76 = memref.load %arg6[%c1] : memref<2xf32, #tpu.memory_space<smem>>
      %77 = vector.broadcast %66 : vector<2x8x1xf32> to vector<2x8x32xf32>
      %78 = arith.subf %58, %77 : vector<2x8x32xf32>
      %79 = vector.broadcast %75 : f32 to vector<2x8x32xf32>
      %80 = arith.mulf %79, %78 : vector<2x8x32xf32>
      %cst_33 = arith.constant 9.99999997E-7 : f32
      %81 = vector.broadcast %cst_33 : f32 to vector<2x8x1xf32>
      %82 = arith.addf %74, %81 : vector<2x8x1xf32>
      %83 = vector.broadcast %82 : vector<2x8x1xf32> to vector<2x8x32xf32>
      %84 = arith.divf %80, %83 : vector<2x8x32xf32>
      %85 = vector.broadcast %76 : f32 to vector<2x8x32xf32>
      %86 = arith.addf %84, %85 : vector<2x8x32xf32>
      %c0_34 = arith.constant 0 : index
      %c0_35 = arith.constant 0 : index
      %c0_36 = arith.constant 0 : index
      %87 = vector.load %arg7[%c0_34, %c0_35, %c0_36] : memref<2x8x32xf32, #tpu.memory_space<vmem>>, vector<2x8x32xf32>
      tpu.vector_store %arg7[%c0_34, %c0_35, %c0_36], %86 {strides = array<i32>} : memref<2x8x32xf32, #tpu.memory_space<vmem>>, vector<2x8x32xf32>,
    } else {
    }
    return
  }
  func.func @transform_0(%arg0: i32) -> (i32, i32, i32) {
    %c0_i32 = arith.constant 0 : i32
    %c0_i32_0 = arith.constant 0 : i32
    %c0_i32_1 = arith.constant 0 : i32
    %c0_i32_2 = arith.constant 0 : i32
    return %c0_i32, %c0_i32_0, %c0_i32_1 : i32, i32, i32
  }
  func.func @transform_1(%arg0: i32) -> (i32, i32, i32, i32) {
    %c0_i32 = arith.constant 0 : i32
    %c0_i32_0 = arith.constant 0 : i32
    %c0_i32_1 = arith.constant 0 : i32
    %c0_i32_2 = arith.constant 0 : i32
    return %arg0, %c0_i32, %c0_i32_0, %c0_i32_1 : i32, i32, i32, i32
  }
  func.func @transform_2(%arg0: i32) -> (i32, i32, i32) {
    %c0_i32 = arith.constant 0 : i32
    %c0_i32_0 = arith.constant 0 : i32
    %c0_i32_1 = arith.constant 0 : i32
    return %arg0, %c0_i32, %c0_i32_0 : i32, i32, i32
  }
  func.func @transform_3(%arg0: i32) -> (i32, i32, i32, i32) {
    %c0_i32 = arith.constant 0 : i32
    %c0_i32_0 = arith.constant 0 : i32
    %c0_i32_1 = arith.constant 0 : i32
    %c0_i32_2 = arith.constant 0 : i32
    return %arg0, %c0_i32, %c0_i32_0, %c0_i32_1 : i32, i32, i32, i32
  }
  func.func @transform_4(%arg0: i32) -> (i32, i32, i32) {
    %c0_i32 = arith.constant 0 : i32
    %c0_i32_0 = arith.constant 0 : i32
    %c0_i32_1 = arith.constant 0 : i32
    return %arg0, %c0_i32, %c0_i32_0 : i32, i32, i32
  }
  func.func @transform_5(%arg0: i32) -> i32 {
    %c0_i32 = arith.constant 0 : i32
    %c0_i32_0 = arith.constant 0 : i32
    return %c0_i32 : i32
  }
  func.func @transform_6(%arg0: i32) -> (i32, i32, i32) {
    %c0_i32 = arith.constant 0 : i32
    %c0_i32_0 = arith.constant 0 : i32
    %c0_i32_1 = arith.constant 0 : i32
    %c0_i32_2 = arith.constant 0 : i32
    return %c0_i32, %c0_i32_0, %c0_i32_1 : i32, i32, i32
  }
}

</mosaic_0001>

<bundles_post_ra>
// kernel: tpu_custom_call.1
= control target key start
LH: loop header
LB: loop body
LE: loop exit
PB: predicated region body
PF: predicated region fallthrough
CT: control target
= control target key end

     0   :  { %11 = vsyncpa [#allocation5], 0  ;;  %s4293_s0 = inlined_call_operand.vmem [shape: f32[2,8,32], index: 0, kind: input, shape index: {}]   ;;  %s4294_s1 = inlined_call_operand.vmem [shape: bf16[2,12,32,8], index: 1, kind: input, shape index: {}]   ;;  %s4295_s2 = inlined_call_operand.vmem [shape: f32[2,12,8], index: 2, kind: input, shape index: {}]   ;;  %s4296_s3 = inlined_call_operand.vmem [shape: bf16[2,4,8,32], index: 3, kind: input, shape index: {}]   ;;  %s4297_s4 = inlined_call_operand.vmem [shape: f32[2,1,32], index: 4, kind: input, shape index: {}]   ;;  %s4298_s5 = inlined_call_operand.vmem [shape: f32[2], index: 5, kind: input, shape index: {}]   ;;  %s4299_s6 = inlined_call_operand.hbm [shape: f32[2,8,32], index: 6, kind: output, shape index: {}]  }
   0x1   :  { %12 = vsyncpa [#allocation4], 0  ;;  %s3770_s21 = smov 0  }
   0x2 LB: > { %s3776_s22 = sadd.s32 4294967295, %s3726_s21   ;;  %p3025_p0 = scmp.ge.s32.totalorder %s3726_s21, 1  ;;  %s3726_s21 = sphi %s3770_s21, %s18_s21  }
   0x3   : > { %p190_p1 = scmp.lt.s32.totalorder %s3726_s21, 3  ;;  %s206_s25 = sshll.u32 %s4298_s5, 4  ;;  %s207_s25 = int_to_ptr.vmem [resolvable:$true] %s206_s25 }
   0x4   : > { %p3587_p4 = scmp.eq.s32.totalorder %s3776_s22, 0  ;;  %s3671_s27 = scalar_lea.vmem %s207_s25, 16 }
   0x5   : > { %p3784_p3 = pnand %p3025_p0, %p190_p1  ;;  %p3672_p7 = scmp.ne.s32.totalorder %s207_s25, %s3671_s27 }
   0x6   : > { %p3679_p11 = scmp.lt.s32.totalorder %s207_s25, %s207_s25  ;;  %p3680_p12 = scmp.lt.s32.totalorder %s3671_s27, %s3671_s27 }
   0x7   : > { %p3583_p5 = pneg %p3784_p3 }
   0x8   : > { %p3681_p13 = por %p3680_p12, %p3679_p11 }
   0x9   : > { %p3584_p6 = pnand %p3587_p4, %p3583_p5 }
   0xb   : > { %p3673_p8 = pneg %p3584_p6 }
   0xd   : > { %p3674_p9 = pnand %p3673_p8, %p3672_p7 }
   0xf   : > { %p3675_p10 = pneg %p3674_p9 }
  0x11   : > { %p3682_p2 = pnand %p3681_p13, %p3675_p10 }
  0x13   : > { %3685 = shalt.err (!%p3682_p2)
}
  0x14   : > { %s3728_s28 = smov [#allocation3]   ;;  %249 = sbr.rel (%p3784_p3) target bundleno = 1648 (0x670), region = 44 }
  0x15   : > { %3586 = dma.vmem_to_smem (!%p3584_p6), %s207_s25, 16, %s3728_s28, [#allocation5]  }
  0x1b   : > { %3717 = dma.done.wait (%p3587_p4), [#allocation5], 16  }
  0x1c   : > { %3719 = vsyncadd (%p3587_p4), [#allocation5], 4294967280 }
  0x1d   : > { %255 = sfence }
  0x1e   : > { %p288_p0 = scmp.lt.s32.totalorder %s3776_s22, 1  ;;  %p4301_p1 = scmp.ne.s32.totalorder %s3776_s22, 0 }
  0x1f   : > { %v311_v0 = vld [vmem:[%s4293_s0] sm:$0xff] (!%p4301_p1)  ;;  %vm313_vm0 = vcmask (!%p4301_p1), 261120   ;;  %v312_v1 = vld [vmem:[%s4293_s0 + $0x8] sm:$0xff] (!%p4301_p1) }
  0x20   : > { %s3801_s29 = scalar_select %p288_p0, %s3776_s22, 1 }
  0x21   : > { %310 = sbr.rel (%p4301_p1) target bundleno = 40 (0x28), region = 52  ;;  %314 = vst.msk [vmem:[#allocation2] sm:$0xff] (!%p4301_p1), %vm313_vm0, %v311_v0  ;;  %315 = vst.msk [vmem:[#allocation2 + $0x8] sm:$0xff] (!%p4301_p1), %vm313_vm0, %v312_v1 }
  0x22   : > { %s3574_s30 = smul.u32 192, %s3801_s29  ;;  %s3116_s7 = sshll.u32 %s3801_s29, 4 }
  0x23   : > { %s3808_s10 = scalar_lea.vmem %s4295_s2, %s3116_s7  ;;  %s3813_s13 = scalar_lea.vmem %s4296_s3, %s3116_s7 }
  0x24   : > { %s3818_s16 = scalar_lea.vmem %s4294_s1, %s3574_s30  ;;  %s305_s19 = scalar_lea.vmem %s4297_s4, %s3801_s29 }
  0x28 PF: > { %v3606_v2 = vld [vmem:[%s3818_s16] sm:$0xff]   ;;  %v3729_v3 = vmov 0.0   ;;  %v3607_v4 = vld [vmem:[%s3818_s16 + $0x8] sm:$0xff]   ;;  %vm3730_vm1 = vmmov 0   ;;  %vm517_vm2 = vcmask 261120   ;;  %v3608_v9 = vld [vmem:[%s3818_s16 + $0x10] sm:$0xff]   ;;  %v376_v47 = vlaneseq }
  0x29   : > { %3238 = vmatprep.subr.bf16.mxu0 %v3729_v3  ;;  %3246 = vmatprep.subr.bf16.mxu1 %v3729_v3  ;;  %v316_v5 = vld [vmem:[#allocation2] sm:$0xff]  ;;  %v317_v6 = vld [vmem:[#allocation2 + $0x8] sm:$0xff]  ;;  %v3609_v10 = vld [vmem:[%s3818_s16 + $0x18] sm:$0xff]   ;;  %v3731_v45 = vmov 1966171168   ;;  %vm1632_vm3 = vcmask 64512  }
  0x2a   : > { %3239 = vmatpush3.bf16.msra.mxu0 %v3606_v2  ;;  %3247 = vmatpush3.bf16.msra.mxu1 %v3606_v2  ;;  %v3842_v7 = vpack.c.bf16 %v316_v5, %v316_v5  ;;  %v3844_v8 = vpack.c.bf16 %v317_v6, %v317_v6  ;;  %v3610_v11 = vld [vmem:[%s3818_s16 + $0x20] sm:$0xff]   ;;  %v3611_v12 = vld [vmem:[%s3818_s16 + $0x28] sm:$0xff]   ;;  %v3612_v13 = vld [vmem:[%s3818_s16 + $0x30] sm:$0xff]   ;;  %v374_v46 = vunpack.c.l.s4 %v3731_v45  ;;  %v377_v51 = vshrl.u32 %v376_v47, 7  ;;  %p3110_p2 = scmp.ne.s32.totalorder %s3776_s22, 1 }
  0x2b   : > { %3240 = vmatprep.subr.bf16.mxu0 %v3729_v3  ;;  %3248 = vmatprep.subr.bf16.mxu1 %v3729_v3  ;;  %v3613_v14 = vld [vmem:[%s3818_s16 + $0x38] sm:$0xff]   ;;  %v3614_v15 = vld [vmem:[%s3818_s16 + $0x40] sm:$0xff]   ;;  %v3615_v16 = vld [vmem:[%s3818_s16 + $0x48] sm:$0xff]   ;;  %vm2116_vm4 = vcmask 1043456   ;;  %s2915_s28 = sld [smem:[#allocation3]] (!%p3110_p2)  ;;  %s3111_s29 = sld [smem:[#allocation3 + $0x1]] (!%p3110_p2) }
  0x2c   : > { %3242 = vmatprep.mubr.msk.bf16.mxu0 %vm3730_vm1, %v3729_v3  ;;  %3250 = vmatprep.mubr.msk.bf16.mxu1 %vm3730_vm1, %v3729_v3  ;;  %v3616_v17 = vld [vmem:[%s3818_s16 + $0x50] sm:$0xff]   ;;  %v3617_v18 = vld [vmem:[%s3818_s16 + $0x58] sm:$0xff]   ;;  %v3618_v19 = vld [vmem:[%s3818_s16 + $0x60] sm:$0xff]   ;;  %v375_v50 = vunpack.c.0.s8 %v374_v46 }
  0x2d   : > { %v3619_v20 = vld [vmem:[%s3818_s16 + $0x68] sm:$0xff]   ;;  %v3620_v21 = vld [vmem:[%s3818_s16 + $0x70] sm:$0xff]   ;;  %v3621_v22 = vld [vmem:[%s3818_s16 + $0x78] sm:$0xff]  }
  0x2e   : > { %3241 = vmatpush3.bf16.msra.mxu0 %v3607_v4  ;;  %3249 = vmatpush3.bf16.msra.mxu1 %v3607_v4  ;;  %v3622_v23 = vld [vmem:[%s3818_s16 + $0x80] sm:$0xff]   ;;  %v3623_v24 = vld [vmem:[%s3818_s16 + $0x88] sm:$0xff]   ;;  %v3624_v25 = vld [vmem:[%s3818_s16 + $0x90] sm:$0xff]   ;;  %v4023_v60 = vsub.s32 %v375_v50, %v377_v51 }
  0x2f   : > { %3254 = vmatprep.subr.bf16.mxu0 %v3729_v3  ;;  %3262 = vmatprep.subr.bf16.mxu1 %v3729_v3  ;;  %v3625_v26 = vld [vmem:[%s3818_s16 + $0x98] sm:$0xff]   ;;  %v3626_v27 = vld [vmem:[%s3818_s16 + $0xa0] sm:$0xff]   ;;  %v3627_v28 = vld [vmem:[%s3818_s16 + $0xa8] sm:$0xff]  }
  0x30   : > { %v3628_v29 = vld [vmem:[%s3818_s16 + $0xb0] sm:$0xff]   ;;  %v3629_v30 = vld [vmem:[%s3818_s16 + $0xb8] sm:$0xff]   ;;  %v368_v52 = vld [vmem:[%s3808_s10] sm:$0xff] }
  0x31   : > { %3243 = vmatmul.mubr.msk.bf16.vlgmr.msra.gmra.mrb[0].mxu0 %vm517_vm2, %v3842_v7  ;;  %3251 = vmatmul.mubr.msk.bf16.vlgmr.msra.gmra.mrb[0].mxu1 %vm517_vm2, %v3844_v8  ;;  %v372_v57 = vcombine.high %v368_v52, %v368_v52 }
  0x32   : > { %3255 = vmatpush3.bf16.msra.mxu0 %v3608_v9  ;;  %3263 = vmatpush3.bf16.msra.mxu1 %v3608_v9  ;;  %v4032_v9 = vsub.s32 0, %v377_v51 }
  0x33   : > { %3256 = vmatprep.subr.bf16.mxu0 %v3729_v3  ;;  %3264 = vmatprep.subr.bf16.mxu1 %v3729_v3  ;;  %v386_v63 = vrot.slane %v372_v57, %v4023_v60 }
  0x34   : > { %3258 = vmatprep.mubr.msk.bf16.mxu0 %vm3730_vm1, %v3729_v3  ;;  %3266 = vmatprep.mubr.msk.bf16.mxu1 %vm3730_vm1, %v3729_v3 }
  0x35   : > { %v402_v5 = vrot.slane %v386_v63, %v4023_v60 }
  0x36   : > { %3257 = vmatpush3.bf16.msra.mxu0 %v3609_v10  ;;  %3265 = vmatpush3.bf16.msra.mxu1 %v3609_v10 }
  0x37   : > { %3270 = vmatprep.subr.bf16.mxu0 %v3729_v3  ;;  %3278 = vmatprep.subr.bf16.mxu1 %v3729_v3  ;;  %v418_v46 = vcombine.high %v402_v5, %v402_v5 }
  0x39   : > { %3259 = vmatmul.mubr.msk.bf16.vlgmr.msra.gmra.mrb[4].mxu0 %vm517_vm2, %v3842_v7  ;;  %3267 = vmatmul.mubr.msk.bf16.vlgmr.msra.gmra.mrb[4].mxu1 %vm517_vm2, %v3844_v8 }
  0x3a   : > { %3271 = vmatpush3.bf16.msra.mxu0 %v3610_v11  ;;  %3279 = vmatpush3.bf16.msra.mxu1 %v3610_v11 }
  0x3b   : > { %3272 = vmatprep.subr.bf16.mxu0 %v3729_v3  ;;  %3280 = vmatprep.subr.bf16.mxu1 %v3729_v3 }
  0x3c   : > { %3274 = vmatprep.mubr.msk.bf16.mxu0 %vm3730_vm1, %v3729_v3  ;;  %3282 = vmatprep.mubr.msk.bf16.mxu1 %vm3730_vm1, %v3729_v3 }
  0x3e   : > { %3273 = vmatpush3.bf16.msra.mxu0 %v3611_v12  ;;  %3281 = vmatpush3.bf16.msra.mxu1 %v3611_v12  ;;  %v464_v12 = vrot.slane %v402_v5, %v4032_v9 }
  0x3f   : > { %3286 = vmatprep.subr.bf16.mxu0 %v3729_v3  ;;  %3294 = vmatprep.subr.bf16.mxu1 %v3729_v3 }
  0x41   : > { %3275 = vmatmul.mubr.msk.bf16.vlgmr.msra.gmra.mrb[8].mxu0 %vm517_vm2, %v3842_v7  ;;  %3283 = vmatmul.mubr.msk.bf16.vlgmr.msra.gmra.mrb[8].mxu1 %vm517_vm2, %v3844_v8 }
  0x42   : > { %3287 = vmatpush3.bf16.msra.mxu0 %v3612_v13  ;;  %3295 = vmatpush3.bf16.msra.mxu1 %v3612_v13  ;;  %v388_v13 = vcombine.high %v386_v63, %v386_v63 }
  0x43   : > { %3288 = vmatprep.subr.bf16.mxu0 %v3729_v3  ;;  %3296 = vmatprep.subr.bf16.mxu1 %v3729_v3 }
  0x44   : > { %3290 = vmatprep.mubr.msk.bf16.mxu0 %vm3730_vm1, %v3729_v3  ;;  %3298 = vmatprep.mubr.msk.bf16.mxu1 %vm3730_vm1, %v3729_v3 }
  0x46   : > { %3289 = vmatpush3.bf16.msra.mxu0 %v3613_v14  ;;  %3297 = vmatpush3.bf16.msra.mxu1 %v3613_v14 }
  0x47   : > { %3302 = vmatprep.subr.bf16.mxu0 %v3729_v3  ;;  %3310 = vmatprep.subr.bf16.mxu1 %v3729_v3 }
  0x49   : > { %3291 = vmatmul.mubr.msk.bf16.vlgmr.msra.gmra.mrb[12].mxu0 %vm517_vm2, %v3842_v7  ;;  %3299 = vmatmul.mubr.msk.bf16.vlgmr.msra.gmra.mrb[12].mxu1 %vm517_vm2, %v3844_v8 }
  0x4a   : > { %3303 = vmatpush3.bf16.msra.mxu0 %v3614_v15  ;;  %3311 = vmatpush3.bf16.msra.mxu1 %v3614_v15 }
  0x4b   : > { %3304 = vmatprep.subr.bf16.mxu0 %v3729_v3  ;;  %3312 = vmatprep.subr.bf16.mxu1 %v3729_v3 }
  0x4c   : > { %3306 = vmatprep.mubr.msk.bf16.mxu0 %vm3730_vm1, %v3729_v3  ;;  %3314 = vmatprep.mubr.msk.bf16.mxu1 %vm3730_vm1, %v3729_v3 }
  0x4e   : > { %3305 = vmatpush3.bf16.msra.mxu0 %v3615_v16  ;;  %3313 = vmatpush3.bf16.msra.mxu1 %v3615_v16 }
  0x4f   : > { %3318 = vmatprep.subr.bf16.mxu0 %v3729_v3  ;;  %3326 = vmatprep.subr.bf16.mxu1 %v3729_v3 }
  0x51   : > { %3307 = vmatmul.mubr.msk.bf16.vlgmr.msra.gmra.mrb[16].mxu0 %vm517_vm2, %v3842_v7  ;;  %3315 = vmatmul.mubr.msk.bf16.vlgmr.msra.gmra.mrb[16].mxu1 %vm517_vm2, %v3844_v8 }
  0x52   : > { %3319 = vmatpush3.bf16.msra.mxu0 %v3616_v17  ;;  %3327 = vmatpush3.bf16.msra.mxu1 %v3616_v17 }
  0x53   : > { %3320 = vmatprep.subr.bf16.mxu0 %v3729_v3  ;;  %3328 = vmatprep.subr.bf16.mxu1 %v3729_v3 }
  0x54   : > { %3322 = vmatprep.mubr.msk.bf16.mxu0 %vm3730_vm1, %v3729_v3  ;;  %3330 = vmatprep.mubr.msk.bf16.mxu1 %vm3730_vm1, %v3729_v3 }
  0x56   : > { %3321 = vmatpush3.bf16.msra.mxu0 %v3617_v18  ;;  %3329 = vmatpush3.bf16.msra.mxu1 %v3617_v18 }
  0x57   : > { %3334 = vmatprep.subr.bf16.mxu0 %v3729_v3  ;;  %3342 = vmatprep.subr.bf16.mxu1 %v3729_v3 }
  0x59   : > { %3323 = vmatmul.mubr.msk.bf16.vlgmr.msra.gmra.mrb[20].mxu0 %vm517_vm2, %v3842_v7  ;;  %3331 = vmatmul.mubr.msk.bf16.vlgmr.msra.gmra.mrb[20].mxu1 %vm517_vm2, %v3844_v8 }
  0x5a   : > { %3335 = vmatpush3.bf16.msra.mxu0 %v3618_v19  ;;  %3343 = vmatpush3.bf16.msra.mxu1 %v3618_v19 }
  0x5b   : > { %3336 = vmatprep.subr.bf16.mxu0 %v3729_v3  ;;  %3344 = vmatprep.subr.bf16.mxu1 %v3729_v3 }
  0x5c   : > { %3338 = vmatprep.mubr.msk.bf16.mxu0 %vm3730_vm1, %v3729_v3  ;;  %3346 = vmatprep.mubr.msk.bf16.mxu1 %vm3730_vm1, %v3729_v3 }
  0x5e   : > { %3337 = vmatpush3.bf16.msra.mxu0 %v3619_v20  ;;  %3345 = vmatpush3.bf16.msra.mxu1 %v3619_v20 }
  0x5f   : > { %3350 = vmatprep.subr.bf16.mxu0 %v3729_v3  ;;  %3358 = vmatprep.subr.bf16.mxu1 %v3729_v3 }
  0x61   : > { %3339 = vmatmul.mubr.msk.bf16.vlgmr.msra.gmra.mrb[24].mxu0 %vm517_vm2, %v3842_v7  ;;  %3347 = vmatmul.mubr.msk.bf16.vlgmr.msra.gmra.mrb[24].mxu1 %vm517_vm2, %v3844_v8 }
  0x62   : > { %3351 = vmatpush3.bf16.msra.mxu0 %v3620_v21  ;;  %3359 = vmatpush3.bf16.msra.mxu1 %v3620_v21  ;;  %v4039_v21 = vrot.slane %v388_v13, %v4023_v60 }
  0x63   : > { %3352 = vmatprep.subr.bf16.mxu0 %v3729_v3  ;;  %3360 = vmatprep.subr.bf16.mxu1 %v3729_v3 }
  0x64   : > { %3354 = vmatprep.mubr.msk.bf16.mxu0 %vm3730_vm1, %v3729_v3  ;;  %3362 = vmatprep.mubr.msk.bf16.mxu1 %vm3730_vm1, %v3729_v3 }
  0x66   : > { %3353 = vmatpush3.bf16.msra.mxu0 %v3621_v22  ;;  %3361 = vmatpush3.bf16.msra.mxu1 %v3621_v22 }
  0x67   : > { %3366 = vmatprep.subr.bf16.mxu0 %v3729_v3  ;;  %3374 = vmatprep.subr.bf16.mxu1 %v3729_v3 }
  0x69   : > { %3355 = vmatmul.mubr.msk.bf16.vlgmr.msra.gmra.mrb[28].mxu0 %vm517_vm2, %v3842_v7  ;;  %3363 = vmatmul.mubr.msk.bf16.vlgmr.msra.gmra.mrb[28].mxu1 %vm517_vm2, %v3844_v8 }
  0x6a   : > { %3367 = vmatpush3.bf16.msra.mxu0 %v3622_v23  ;;  %3375 = vmatpush3.bf16.msra.mxu1 %v3622_v23 }
  0x6b   : > { %3368 = vmatprep.subr.bf16.mxu0 %v3729_v3  ;;  %3376 = vmatprep.subr.bf16.mxu1 %v3729_v3 }
  0x6c   : > { %3370 = vmatprep.mubr.msk.bf16.mxu0 %vm3730_vm1, %v3729_v3  ;;  %3378 = vmatprep.mubr.msk.bf16.mxu1 %vm3730_vm1, %v3729_v3 }
  0x6e   : > { %3369 = vmatpush3.bf16.msra.mxu0 %v3623_v24  ;;  %3377 = vmatpush3.bf16.msra.mxu1 %v3623_v24 }
  0x6f   : > { %3382 = vmatprep.subr.bf16.mxu0 %v3729_v3  ;;  %3390 = vmatprep.subr.bf16.mxu1 %v3729_v3 }
  0x71   : > { %3371 = vmatmul.mubr.msk.bf16.vlgmr.msra.gmra.mrb[32].mxu0 %vm517_vm2, %v3842_v7  ;;  %3379 = vmatmul.mubr.msk.bf16.vlgmr.msra.gmra.mrb[32].mxu1 %vm517_vm2, %v3844_v8 }
  0x72   : > { %3383 = vmatpush3.bf16.msra.mxu0 %v3624_v25  ;;  %3391 = vmatpush3.bf16.msra.mxu1 %v3624_v25 }
  0x73   : > { %3384 = vmatprep.subr.bf16.mxu0 %v3729_v3  ;;  %3392 = vmatprep.subr.bf16.mxu1 %v3729_v3 }
  0x74   : > { %3386 = vmatprep.mubr.msk.bf16.mxu0 %vm3730_vm1, %v3729_v3  ;;  %3394 = vmatprep.mubr.msk.bf16.mxu1 %vm3730_vm1, %v3729_v3 }
  0x76   : > { %3385 = vmatpush3.bf16.msra.mxu0 %v3625_v26  ;;  %3393 = vmatpush3.bf16.msra.mxu1 %v3625_v26 }
  0x77   : > { %3398 = vmatprep.subr.bf16.mxu0 %v3729_v3  ;;  %3406 = vmatprep.subr.bf16.mxu1 %v3729_v3 }
  0x79   : > { %3387 = vmatmul.mubr.msk.bf16.vlgmr.msra.gmra.mrb[36].mxu0 %vm517_vm2, %v3842_v7  ;;  %3395 = vmatmul.mubr.msk.bf16.vlgmr.msra.gmra.mrb[36].mxu1 %vm517_vm2, %v3844_v8 }
  0x7a   : > { %3399 = vmatpush3.bf16.msra.mxu0 %v3626_v27  ;;  %3407 = vmatpush3.bf16.msra.mxu1 %v3626_v27 }
  0x7b   : > { %3400 = vmatprep.subr.bf16.mxu0 %v3729_v3  ;;  %3408 = vmatprep.subr.bf16.mxu1 %v3729_v3 }
  0x7c   : > { %3402 = vmatprep.mubr.msk.bf16.mxu0 %vm3730_vm1, %v3729_v3  ;;  %3410 = vmatprep.mubr.msk.bf16.mxu1 %vm3730_vm1, %v3729_v3 }
  0x7e   : > { %3401 = vmatpush3.bf16.msra.mxu0 %v3627_v28  ;;  %3409 = vmatpush3.bf16.msra.mxu1 %v3627_v28 }
  0x7f   : > { %3414 = vmatprep.subr.bf16.mxu0 %v3729_v3  ;;  %3422 = vmatprep.subr.bf16.mxu1 %v3729_v3 }
  0x81   : > { %3403 = vmatmul.mubr.msk.bf16.vlgmr.msra.gmra.mrb[40].mxu0 %vm517_vm2, %v3842_v7  ;;  %3411 = vmatmul.mubr.msk.bf16.vlgmr.msra.gmra.mrb[40].mxu1 %vm517_vm2, %v3844_v8 }
  0x82   : > { %3418 = vmatprep.mubr.msk.bf16.mxu0 %vm3730_vm1, %v3729_v3  ;;  %3426 = vmatprep.mubr.msk.bf16.mxu1 %vm3730_vm1, %v3729_v3 }
  0x83   : > { %3415 = vmatpush3.bf16.msra.mxu0 %v3628_v29  ;;  %3423 = vmatpush3.bf16.msra.mxu1 %v3628_v29 }
  0x84   : > { %3416 = vmatprep.subr.bf16.mxu0 %v3729_v3  ;;  %3424 = vmatprep.subr.bf16.mxu1 %v3729_v3 }
  0x87   : > { %3417 = vmatpush3.bf16.msra.mxu0 %v3629_v30  ;;  %3425 = vmatpush3.bf16.msra.mxu1 %v3629_v30 }
  0x88   : > { %3430 = vmatprep.subr.bf16.mxu0 %v3729_v3  ;;  %3436 = vmatprep.subr.bf16.mxu1 %v3729_v3 }
  0x8a   : > { %3419 = vmatmul.mubr.msk.bf16.vlgmr.msra.gmra.mrb[44].mxu0 %vm517_vm2, %v3842_v7  ;;  %3427 = vmatmul.mubr.msk.bf16.vlgmr.msra.gmra.mrb[44].mxu1 %vm517_vm2, %v3844_v8  ;;  %v379_v8 = vrot.slane %v368_v52, %v4023_v60 }
  0x8b   : > { %3432 = vmatprep.mubr.msk.bf16.mxu0 %vm3730_vm1, %v3729_v3  ;;  %3438 = vmatprep.mubr.msk.bf16.mxu1 %vm3730_vm1, %v3729_v3 }
  0x8c   : > { %v4036_v14 = vrot.slane %v379_v8, %v4023_v60  ;;  %v387_v22 = vcombine.high %v379_v8, %v379_v8 }
  0x8e   : > { %v448_v25 = vrot.slane %v4036_v14, %v4032_v9 }
 0x104   : > { %v4010_v31 = vpop.f32.mrb[0].mxu0  ;;  %v4012_v32 = vpop.f32.mrb[0].mxu1 }
 0x105   : > { %v3244_v33 = vpop.f32.mrb[1].mxu0  ;;  %v3252_v34 = vpop.f32.mrb[1].mxu1 }
 0x106   : > { %v558_v35 = vpop.f32.mrb[2].mxu0  ;;  %v601_v36 = vpop.f32.mrb[2].mxu1  ;;  %v468_v34 = vrot.slane %v4039_v21, %v4032_v9 }
 0x107   : > { %v3245_v37 = vpop.f32.mrb[3].mxu0  ;;  %v3253_v38 = vpop.f32.mrb[3].mxu1  ;;  %v4048_v35 = vrot.slane %v387_v22, %v4023_v60  ;;  %v556_v36 = vadd.f32 %v4010_v31, %v448_v25 }
 0x108   : > { %v599_v37 = vadd.f32 %v4012_v32, %v448_v25 }
 0x109   : > { %v452_v47 = vrot.slane %v4048_v35, %v4032_v9  ;;  %v1616_v50 = vpack.c.bf16 %v556_v36, %v556_v36 }
 0x10a   : > { %v1617_v31 = vpack.c.bf16 %v599_v37, %v599_v37 }
 0x10c   : > { %v4014_v39 = vpop.f32.mrb[4].mxu0  ;;  %v4016_v40 = vpop.f32.mrb[4].mxu1 }
 0x10d   : > { %v3260_v41 = vpop.f32.mrb[5].mxu0  ;;  %v3268_v42 = vpop.f32.mrb[5].mxu1 }
 0x10e   : > { %v653_v43 = vpop.f32.mrb[6].mxu0  ;;  %v693_v44 = vpop.f32.mrb[6].mxu1 }
 0x10f   : > { %v3261_v48 = vpop.f32.mrb[7].mxu0  ;;  %v3269_v49 = vpop.f32.mrb[7].mxu1 }
 0x114   : > { %v4019_v53 = vpop.f32.mrb[8].mxu0  ;;  %v4021_v54 = vpop.f32.mrb[8].mxu1 }
 0x115   : > { %v3276_v55 = vpop.f32.mrb[9].mxu0  ;;  %v3284_v56 = vpop.f32.mrb[9].mxu1 }
 0x116   : > { %v745_v58 = vpop.f32.mrb[10].mxu0  ;;  %v785_v59 = vpop.f32.mrb[10].mxu1 }
 0x117   : > { %v3277_v61 = vpop.f32.mrb[11].mxu0  ;;  %v3285_v62 = vpop.f32.mrb[11].mxu1  ;;  %v472_v58 = vrot.slane %v418_v46, %v4032_v9  ;;  %v417_v59 = vcombine.high %v4036_v14, %v4036_v14 }
 0x118   : > { %v651_v61 = vadd.f32 %v4014_v39, %v452_v47  ;;  %v691_v62 = vadd.f32 %v4016_v40, %v452_v47  ;;  %v420_v39 = vcombine.high %v4039_v21, %v4039_v21 }
 0x119   : > { %v456_v40 = vrot.slane %v417_v59, %v4032_v9 }
 0x11b   : > { %v743_v21 = vadd.f32 %v4019_v53, %v456_v40  ;;  %v783_v22 = vadd.f32 %v4021_v54, %v456_v40 }
 0x11c   : > { %v4026_v0 = vpop.f32.mrb[12].mxu0  ;;  %v4028_v1 = vpop.f32.mrb[12].mxu1 }
 0x11d   : > { %v3292_v2 = vpop.f32.mrb[13].mxu0  ;;  %v3300_v4 = vpop.f32.mrb[13].mxu1 }
 0x11e   : > { %v837_v6 = vpop.f32.mrb[14].mxu0  ;;  %v877_v7 = vpop.f32.mrb[14].mxu1 }
 0x11f   : > { %v3293_v10 = vpop.f32.mrb[15].mxu0  ;;  %v3301_v11 = vpop.f32.mrb[15].mxu1 }
 0x120   : > { %v1618_v11 = vpack.c.bf16 %v651_v61, %v651_v61 }
 0x124   : > { %v926_v15 = vpop.f32.mrb[16].mxu0  ;;  %v966_v16 = vpop.f32.mrb[16].mxu1 }
 0x125   : > { %v927_v17 = vadd.f32 %v926_v15, %v464_v12  ;;  %v967_v18 = vadd.f32 %v966_v16, %v464_v12  ;;  %v3308_v19 = vpop.f32.mrb[17].mxu0  ;;  %v3316_v20 = vpop.f32.mrb[17].mxu1  ;;  %v1619_v12 = vpack.c.bf16 %v691_v62, %v691_v62 }
 0x126   : > { %v929_v23 = vpop.f32.mrb[18].mxu0  ;;  %v969_v24 = vpop.f32.mrb[18].mxu1  ;;  %v476_v19 = vrot.slane %v420_v39, %v4032_v9  ;;  %v419_v20 = vcombine.high %v4048_v35, %v4048_v35 }
 0x127   : > { %v1624_v26 = vpack.c.bf16 %v927_v17, %v927_v17  ;;  %v1625_v27 = vpack.c.bf16 %v967_v18, %v967_v18  ;;  %v3309_v28 = vpop.f32.mrb[19].mxu0  ;;  %v3317_v29 = vpop.f32.mrb[19].mxu1 }
 0x128   : > { %v460_v53 = vrot.slane %v419_v20, %v4032_v9 }
 0x129   : > { %v1637_v30 = vsel %vm1632_vm3, %v1624_v26, 0  ;;  %v1683_v33 = vsel %vm1632_vm3, %v1625_v27, 0 }
 0x12a   : > { %3431 = vmatpush3.bf16.xpose.msra.mxu0 %v1637_v30  ;;  %3437 = vmatpush3.bf16.xpose.msra.mxu1 %v1683_v33  ;;  %v1620_v30 = vpack.c.bf16 %v743_v21, %v743_v21  ;;  %v1621_v33 = vpack.c.bf16 %v783_v22, %v783_v22 }
 0x12b   : > { %3442 = vmatprep.subr.bf16.mxu0 %v3729_v3  ;;  %3448 = vmatprep.subr.bf16.mxu1 %v3729_v3 }
 0x12c   : > { %v1018_v38 = vpop.f32.mrb[20].mxu0  ;;  %v1058_v41 = vpop.f32.mrb[20].mxu1 }
 0x12d   : > { %v1019_v42 = vadd.f32 %v1018_v38, %v468_v34  ;;  %v1059_v43 = vadd.f32 %v1058_v41, %v468_v34  ;;  %v3324_v44 = vpop.f32.mrb[21].mxu0  ;;  %v3332_v45 = vpop.f32.mrb[21].mxu1 }
 0x12e   : > { %v1021_v48 = vpop.f32.mrb[22].mxu0  ;;  %v1061_v49 = vpop.f32.mrb[22].mxu1 }
 0x12f   : > { %v1626_v51 = vpack.c.bf16 %v1019_v42, %v1019_v42  ;;  %v1627_v32 = vpack.c.bf16 %v1059_v43, %v1059_v43  ;;  %v3325_v52 = vpop.f32.mrb[23].mxu0  ;;  %v3333_v55 = vpop.f32.mrb[23].mxu1  ;;  %v835_v42 = vadd.f32 %v4026_v0, %v460_v53  ;;  %v875_v43 = vadd.f32 %v4028_v1, %v460_v53  ;;  %v3036_v0 = vld.sshfl [vmem:[%s3808_s10 + $0x8] sm:$0x33 pattern:$0x75316420] }
 0x130   : > { %v435_v1 = vrot.slane %v3036_v0, %v4023_v60  ;;  %v428_v47 = vcombine.high %v3036_v0, %v3036_v0 }
 0x131   : > { %v1729_v56 = vsel %vm1632_vm3, %v1626_v51, 0  ;;  %v1775_v57 = vsel %vm1632_vm3, %v1627_v32, 0  ;;  %3433 = vmatmul.mubr.msk.bf16.vlgmr.msra.gmra.mrb[48].mxu0 %vm1632_vm3, %v1616_v50  ;;  %3439 = vmatmul.mubr.msk.bf16.vlgmr.msra.gmra.mrb[48].mxu1 %vm1632_vm3, %v1617_v31  ;;  %v1622_v44 = vpack.c.bf16 %v835_v42, %v835_v42  ;;  %v1623_v45 = vpack.c.bf16 %v875_v43, %v875_v43 }
 0x132   : > { %3443 = vmatpush3.bf16.xpose.msra.mxu0 %v1729_v56  ;;  %3449 = vmatpush3.bf16.xpose.msra.mxu1 %v1775_v57  ;;  %v480_v46 = vrot.slane %v435_v1, %v4032_v9  ;;  %v442_v52 = vrot.slane %v428_v47, %v4023_v60  ;;  %v443_v40 = vcombine.high %v435_v1, %v435_v1 }
 0x133   : > { %3444 = vmatprep.mubr.msk.bf16.mxu0 %vm3730_vm1, %v3729_v3  ;;  %3450 = vmatprep.mubr.msk.bf16.mxu1 %vm3730_vm1, %v3729_v3 }
 0x134   : > { %v1110_v63 = vpop.f32.mrb[24].mxu0  ;;  %v1150_v2 = vpop.f32.mrb[24].mxu1  ;;  %3454 = vmatprep.subr.bf16.mxu0 %v3729_v3  ;;  %3460 = vmatprep.subr.bf16.mxu1 %v3729_v3 }
 0x135   : > { %v1111_v4 = vadd.f32 %v1110_v63, %v472_v58  ;;  %v1151_v5 = vadd.f32 %v1150_v2, %v472_v58  ;;  %v3340_v6 = vpop.f32.mrb[25].mxu0  ;;  %v3348_v7 = vpop.f32.mrb[25].mxu1  ;;  %v484_v2 = vrot.slane %v442_v52, %v4032_v9 }
 0x136   : > { %v1113_v8 = vpop.f32.mrb[26].mxu0  ;;  %v1153_v10 = vpop.f32.mrb[26].mxu1 }
 0x137   : > { %v1628_v13 = vpack.c.bf16 %v1111_v4, %v1111_v4  ;;  %v1629_v14 = vpack.c.bf16 %v1151_v5, %v1151_v5  ;;  %v3341_v15 = vpop.f32.mrb[27].mxu0  ;;  %v3349_v16 = vpop.f32.mrb[27].mxu1 }
 0x139   : > { %v1821_v17 = vsel %vm1632_vm3, %v1628_v13, 0  ;;  %v1867_v18 = vsel %vm1632_vm3, %v1629_v14, 0  ;;  %3445 = vmatmul.mubr.msk.bf16.vlgmr.msra.gmra.mrb[52].mxu0 %vm1632_vm3, %v1618_v11  ;;  %3451 = vmatmul.mubr.msk.bf16.vlgmr.msra.gmra.mrb[52].mxu1 %vm1632_vm3, %v1619_v12  ;;  %v488_v13 = vrot.slane %v443_v40, %v4032_v9 }
 0x13a   : > { %3455 = vmatpush3.bf16.xpose.msra.mxu0 %v1821_v17  ;;  %3461 = vmatpush3.bf16.xpose.msra.mxu1 %v1867_v18 }
 0x13b   : > { %3456 = vmatprep.mubr.msk.bf16.mxu0 %vm3730_vm1, %v3729_v3  ;;  %3462 = vmatprep.mubr.msk.bf16.mxu1 %vm3730_vm1, %v3729_v3 }
 0x13c   : > { %v1202_v23 = vpop.f32.mrb[28].mxu0  ;;  %v1242_v24 = vpop.f32.mrb[28].mxu1  ;;  %3466 = vmatprep.subr.bf16.mxu0 %v3729_v3  ;;  %3472 = vmatprep.subr.bf16.mxu1 %v3729_v3 }
 0x13d   : > { %v1203_v25 = vadd.f32 %v1202_v23, %v476_v19  ;;  %v1243_v26 = vadd.f32 %v1242_v24, %v476_v19  ;;  %v3356_v27 = vpop.f32.mrb[29].mxu0  ;;  %v3364_v28 = vpop.f32.mrb[29].mxu1  ;;  %v444_v24 = vcombine.high %v442_v52, %v442_v52 }
 0x13e   : > { %v1205_v29 = vpop.f32.mrb[30].mxu0  ;;  %v1245_v54 = vpop.f32.mrb[30].mxu1 }
 0x13f   : > { %v1630_v34 = vpack.c.bf16 %v1203_v25, %v1203_v25  ;;  %v1631_v35 = vpack.c.bf16 %v1243_v26, %v1243_v26  ;;  %v3357_v36 = vpop.f32.mrb[31].mxu0  ;;  %v3365_v37 = vpop.f32.mrb[31].mxu1  ;;  %v492_v25 = vrot.slane %v444_v24, %v4032_v9 }
 0x141   : > { %v1913_v38 = vsel %vm1632_vm3, %v1630_v34, 0  ;;  %v1959_v41 = vsel %vm1632_vm3, %v1631_v35, 0  ;;  %3457 = vmatmul.mubr.msk.bf16.vlgmr.msra.gmra.mrb[56].mxu0 %vm1632_vm3, %v1620_v30  ;;  %3463 = vmatmul.mubr.msk.bf16.vlgmr.msra.gmra.mrb[56].mxu1 %vm1632_vm3, %v1621_v33 }
 0x142   : > { %3467 = vmatpush3.bf16.xpose.msra.mxu0 %v1913_v38  ;;  %3473 = vmatpush3.bf16.xpose.msra.mxu1 %v1959_v41 }
 0x143   : > { %3468 = vmatprep.mubr.msk.bf16.mxu0 %vm3730_vm1, %v3729_v3  ;;  %3474 = vmatprep.mubr.msk.bf16.mxu1 %vm3730_vm1, %v3729_v3 }
 0x144   : > { %3478 = vmatprep.subr.bf16.mxu0 %v3729_v3  ;;  %3484 = vmatprep.subr.bf16.mxu1 %v3729_v3  ;;  %v1294_v48 = vpop.f32.mrb[32].mxu0  ;;  %v1334_v49 = vpop.f32.mrb[32].mxu1 }
 0x145   : > { %v1295_v50 = vadd.f32 %v1294_v48, %v480_v46  ;;  %v3372_v31 = vpop.f32.mrb[33].mxu0  ;;  %v1335_v51 = vadd.f32 %v1334_v49, %v480_v46  ;;  %v3380_v32 = vpop.f32.mrb[33].mxu1 }
 0x146   : > { %v1297_v55 = vpop.f32.mrb[34].mxu0  ;;  %v1337_v56 = vpop.f32.mrb[34].mxu1 }
 0x147   : > { %v2105_v57 = vpack.c.bf16 %v1295_v50, %v1295_v50  ;;  %v3373_v58 = vpop.f32.mrb[35].mxu0  ;;  %v2106_v59 = vpack.c.bf16 %v1335_v51, %v1335_v51  ;;  %v3381_v61 = vpop.f32.mrb[35].mxu1 }
 0x149   : > { %3469 = vmatmul.mubr.msk.bf16.vlgmr.msra.gmra.mrb[60].mxu0 %vm1632_vm3, %v1622_v44  ;;  %3475 = vmatmul.mubr.msk.bf16.vlgmr.msra.gmra.mrb[60].mxu1 %vm1632_vm3, %v1623_v45  ;;  %v2118_v62 = vsel %vm2116_vm4, %v2105_v57, 0  ;;  %v2164_v63 = vsel %vm2116_vm4, %v2106_v59, 0 }
 0x14a   : > { %3480 = vmatprep.mubr.msk.bf16.mxu0 %vm3730_vm1, %v3729_v3  ;;  %3486 = vmatprep.mubr.msk.bf16.mxu1 %vm3730_vm1, %v3729_v3 }
 0x14b   : > { %3479 = vmatpush3.bf16.msra.mxu0 %v2118_v62  ;;  %3485 = vmatpush3.bf16.msra.mxu1 %v2164_v63 }
 0x14c   : > { %3490 = vmatprep.subr.bf16.mxu0 %v3729_v3  ;;  %3496 = vmatprep.subr.bf16.mxu1 %v3729_v3  ;;  %v1386_v60 = vpop.f32.mrb[36].mxu0  ;;  %v1426_v4 = vpop.f32.mrb[36].mxu1 }
 0x14d   : > { %v4117_v5 = vadd.f32 %v1386_v60, %v484_v2  ;;  %v3388_v6 = vpop.f32.mrb[37].mxu0  ;;  %v4119_v7 = vadd.f32 %v1426_v4, %v484_v2  ;;  %v3396_v39 = vpop.f32.mrb[37].mxu1 }
 0x14e   : > { %v1389_v8 = vpop.f32.mrb[38].mxu0  ;;  %v1429_v10 = vpop.f32.mrb[38].mxu1 }
 0x14f   : > { %v3389_v11 = vpop.f32.mrb[39].mxu0  ;;  %v3397_v12 = vpop.f32.mrb[39].mxu1 }
 0x154   : > { %v1478_v14 = vpop.f32.mrb[40].mxu0  ;;  %v1518_v15 = vpop.f32.mrb[40].mxu1 }
 0x155   : > { %v4122_v16 = vadd.f32 %v1478_v14, %v488_v13  ;;  %v3404_v17 = vpop.f32.mrb[41].mxu0  ;;  %v4124_v18 = vadd.f32 %v1518_v15, %v488_v13  ;;  %v3412_v19 = vpop.f32.mrb[41].mxu1 }
 0x156   : > { %v1481_v20 = vpop.f32.mrb[42].mxu0  ;;  %v1521_v21 = vpop.f32.mrb[42].mxu1 }
 0x157   : > { %v3405_v22 = vpop.f32.mrb[43].mxu0  ;;  %v3413_v23 = vpop.f32.mrb[43].mxu1 }
 0x15d   : > { %v1570_v26 = vpop.f32.mrb[44].mxu0  ;;  %v1610_v27 = vpop.f32.mrb[44].mxu1 }
 0x15e   : > { %v4127_v28 = vadd.f32 %v1570_v26, %v492_v25  ;;  %v3420_v53 = vpop.f32.mrb[45].mxu0  ;;  %v4129_v29 = vadd.f32 %v1610_v27, %v492_v25  ;;  %v3428_v54 = vpop.f32.mrb[45].mxu1 }
 0x15f   : > { %v1573_v30 = vpop.f32.mrb[46].mxu0  ;;  %v1613_v33 = vpop.f32.mrb[46].mxu1 }
 0x160   : > { %v3421_v34 = vpop.f32.mrb[47].mxu0  ;;  %v3429_v35 = vpop.f32.mrb[47].mxu1 }
 0x204   : > { %v1673_v36 = vpop.f32.mrb[48].mxu0  ;;  %v1719_v37 = vpop.f32.mrb[48].mxu1 }
 0x205   : > { %v2001_v38 = vmul.f32 0.35355338, %v1673_v36  ;;  %v3434_v41 = vpop.f32.mrb[49].mxu0  ;;  %v3440_v42 = vpop.f32.mrb[49].mxu1  ;;  %v2002_v9 = vmul.f32 0.35355338, %v1719_v37 }
 0x206   : > { %v1676_v43 = vpop.f32.mrb[50].mxu0  ;;  %v1722_v44 = vpop.f32.mrb[50].mxu1 }
 0x207   : > { %v3435_v45 = vpop.f32.mrb[51].mxu0  ;;  %v3441_v0 = vpop.f32.mrb[51].mxu1  ;;  %v2009_v1 = vsel %vm1632_vm3, %v2001_v38, -inf  ;;  %v2012_v46 = vsel %vm1632_vm3, %v2002_v9, -inf }
 0x208   : > { %2010 = vmax.xlane.f32.xlu0 %v2009_v1 }
 0x20c   : > { %v1811_v47 = vpop.f32.mrb[52].mxu1  ;;  %2013 = vmax.xlane.f32.xlu0 %v2012_v46  ;;  %v1765_v48 = vpop.f32.mrb[52].mxu0 }
 0x20d   : > { %v2003_v49 = vmul.f32 0.35355338, %v1765_v48  ;;  %v3446_v50 = vpop.f32.mrb[53].mxu0  ;;  %v3452_v31 = vpop.f32.mrb[53].mxu1  ;;  %v2004_v52 = vmul.f32 0.35355338, %v1811_v47 }
 0x20e   : > { %v1768_v51 = vpop.f32.mrb[54].mxu0  ;;  %v1814_v32 = vpop.f32.mrb[54].mxu1 }
 0x20f   : > { %v3447_v55 = vpop.f32.mrb[55].mxu0  ;;  %v3453_v56 = vpop.f32.mrb[55].mxu1  ;;  %v2015_v57 = vsel %vm1632_vm3, %v2003_v49, -inf  ;;  %v2018_v58 = vsel %vm1632_vm3, %v2004_v52, -inf }
 0x210   : > { %2016 = vmax.xlane.f32.xlu1 %v2015_v57 }
 0x214   : > { %v1903_v59 = vpop.f32.mrb[56].mxu1  ;;  %2019 = vmax.xlane.f32.xlu1 %v2018_v58  ;;  %v1857_v61 = vpop.f32.mrb[56].mxu0 }
 0x215   : > { %v2006_v62 = vmul.f32 0.35355338, %v1903_v59  ;;  %v2005_v63 = vmul.f32 0.35355338, %v1857_v61  ;;  %v3458_v2 = vpop.f32.mrb[57].mxu0  ;;  %v3464_v60 = vpop.f32.mrb[57].mxu1 }
 0x216   : > { %v1860_v4 = vpop.f32.mrb[58].mxu0  ;;  %v1906_v6 = vpop.f32.mrb[58].mxu1 }
 0x217   : > { %v3459_v39 = vpop.f32.mrb[59].mxu0  ;;  %v3465_v40 = vpop.f32.mrb[59].mxu1  ;;  %v2024_v8 = vsel %vm1632_vm3, %v2006_v62, -inf  ;;  %v2021_v10 = vsel %vm1632_vm3, %v2005_v63, -inf }
 0x218   : > { %2025 = vmax.xlane.f32.xlu1 %v2024_v8  ;;  %2022 = vmax.xlane.f32.xlu0 %v2021_v10  ;;  %v2107_v10 = vpack.c.bf16 %v4117_v5, %v4117_v5 }
 0x21c   : > { %v1949_v11 = vpop.f32.mrb[60].mxu0  ;;  %v1995_v12 = vpop.f32.mrb[60].mxu1 }
 0x21d   : > { %v2007_v13 = vmul.f32 0.35355338, %v1949_v11  ;;  %v2008_v14 = vmul.f32 0.35355338, %v1995_v12  ;;  %v3470_v15 = vpop.f32.mrb[61].mxu0  ;;  %v3476_v17 = vpop.f32.mrb[61].mxu1 }
 0x21e   : > { %v1952_v19 = vpop.f32.mrb[62].mxu0  ;;  %v1998_v20 = vpop.f32.mrb[62].mxu1  ;;  %v2210_v15 = vsel %vm2116_vm4, %v2107_v10, 0  ;;  %v2108_v17 = vpack.c.bf16 %v4119_v7, %v4119_v7  ;;  %v2109_v7 = vpack.c.bf16 %v4122_v16, %v4122_v16 }
 0x21f   : > { %v3471_v21 = vpop.f32.mrb[63].mxu0  ;;  %v3477_v22 = vpop.f32.mrb[63].mxu1  ;;  %v2030_v23 = vsel %vm1632_vm3, %v2008_v14, -inf  ;;  %v2027_v24 = vsel %vm1632_vm3, %v2007_v13, -inf }
 0x220   : > { %2031 = vmax.xlane.f32.xlu1 %v2030_v23  ;;  %2028 = vmax.xlane.f32.xlu0 %v2027_v24  ;;  %v2256_v23 = vsel %vm2116_vm4, %v2108_v17, 0 }
 0x295   : > { %v2011_v25 = vpop.xlane.xlu0 %2010 }
 0x296   : > { %v2033_v26 = vsub.f32 %v2001_v38, %v2011_v25 }
 0x298   : > { %v2041_v27 = vmul.f32 1.442695, %v2033_v26 }
 0x299   : > { %v2014_v53 = vpop.xlane.xlu0 %2013 }
 0x29a   : > { %3631 = vpow2.f32 %v2041_v27  ;;  %v2034_v54 = vsub.f32 %v2002_v9, %v2014_v53  ;;  %v2302_v27 = vsel %vm2116_vm4, %v2109_v7, 0  ;;  %v2110_v53 = vpack.c.bf16 %v4124_v18, %v4124_v18 }
 0x29b   : > { %v2111_v18 = vpack.c.bf16 %v4127_v28, %v4127_v28 }
 0x29c   : > { %v2043_v30 = vmul.f32 1.442695, %v2034_v54 }
 0x29d   : > { %v2017_v33 = vpop.xlane.xlu1 %2016 }
 0x29e   : > { %3633 = vpow2.f32 %v2043_v30  ;;  %v2035_v34 = vsub.f32 %v2003_v49, %v2017_v33 }
 0x2a0   : > { %v2045_v35 = vmul.f32 1.442695, %v2035_v34 }
 0x2a1   : > { %v2020_v36 = vpop.xlane.xlu1 %2019 }
 0x2a2   : > { %3635 = vpow2.f32 %v2045_v35  ;;  %v2036_v37 = vsub.f32 %v2004_v52, %v2020_v36  ;;  %v2348_v36 = vsel %vm2116_vm4, %v2110_v53, 0 }
 0x2a4   : > { %v3632_v41 = vpop.eup %3631  ;;  %v2047_v42 = vmul.f32 1.442695, %v2036_v37 }
 0x2a5   : > { %v2026_v43 = vpop.xlane.xlu1 %2025  ;;  %v2023_v44 = vpop.xlane.xlu0 %2022  ;;  %v2057_v45 = vsel %vm1632_vm3, %v3632_v41, 0.0 }
 0x2a6   : > { %3637 = vpow2.f32 %v2047_v42  ;;  %v2038_v38 = vsub.f32 %v2006_v62, %v2026_v43  ;;  %v2037_v0 = vsub.f32 %v2005_v63, %v2023_v44  ;;  %2058 = vadd.xlane.f32.xlu0 %v2057_v45  ;;  %v2112_v43 = vpack.c.bf16 %v4129_v29, %v4129_v29 }
 0x2a7   : > { %v2394_v44 = vsel %vm2116_vm4, %v2111_v18, 0 }
 0x2a8   : > { %v3634_v1 = vpop.eup %3633  ;;  %v2051_v9 = vmul.f32 1.442695, %v2038_v38  ;;  %v2049_v46 = vmul.f32 1.442695, %v2037_v0  ;;  %v2440_v0 = vsel %vm2116_vm4, %v2112_v43, 0 }
 0x2a9   : > { %v2060_v47 = vsel %vm1632_vm3, %v3634_v1, 0.0 }
 0x2aa   : > { %3639 = vpow2.f32 %v2051_v9  ;;  %2061 = vadd.xlane.f32.xlu1 %v2060_v47  ;;  %v2482_v47 = vld [vmem:[%s3813_s13] sm:$0xf] }
 0x2ab   : > { %3641 = vpow2.f32 %v2049_v46 }
 0x2ac   : > { %v3636_v48 = vpop.eup %3635 }
 0x2ad   : > { %v2032_v49 = vpop.xlane.xlu1 %2031  ;;  %v2029_v50 = vpop.xlane.xlu0 %2028  ;;  %v2063_v31 = vsel %vm1632_vm3, %v3636_v48, 0.0 }
 0x2ae   : > { %v2040_v51 = vsub.f32 %v2008_v14, %v2032_v49  ;;  %v2039_v32 = vsub.f32 %v2007_v13, %v2029_v50  ;;  %2064 = vadd.xlane.f32.xlu0 %v2063_v31  ;;  %v2483_v49 = vld [vmem:[%s3813_s13 + $0x4] sm:$0xf] }
 0x2b0   : > { %v3638_v52 = vpop.eup %3637  ;;  %v2055_v55 = vmul.f32 1.442695, %v2040_v51  ;;  %v2053_v56 = vmul.f32 1.442695, %v2039_v32  ;;  %v2587_v32 = vsel %vm2116_vm4, %v2483_v49, 0 }
 0x2b1   : > { %v2066_v57 = vsel %vm1632_vm3, %v3638_v52, 0.0 }
 0x2b2   : > { %3643 = vpow2.f32 %v2055_v55  ;;  %2067 = vadd.xlane.f32.xlu1 %v2066_v57 }
 0x2b3   : > { %3645 = vpow2.f32 %v2053_v56 }
 0x2b4   : > { %v4143_v58 = vpop.eup %3639 }
 0x2b5   : > { %v4145_v59 = vpop.eup %3641  ;;  %v2072_v61 = vsel %vm1632_vm3, %v4143_v58, 0.0 }
 0x2b6   : > { %2073 = vadd.xlane.f32.xlu1 %v2072_v61  ;;  %v2069_v62 = vsel %vm1632_vm3, %v4145_v59, 0.0  ;;  %v2484_v61 = vld [vmem:[%s3813_s13 + $0x8] sm:$0xf] }
 0x2b7   : > { %2070 = vadd.xlane.f32.xlu0 %v2069_v62 }
 0x2bc   : > { %v4151_v63 = vpop.eup %3643 }
 0x2bd   : > { %v4153_v2 = vpop.eup %3645  ;;  %v2078_v60 = vsel %vm1632_vm3, %v4151_v63, 0.0 }
 0x2be   : > { %2079 = vadd.xlane.f32.xlu1 %v2078_v60  ;;  %v2075_v4 = vsel %vm1632_vm3, %v4153_v2, 0.0 }
 0x2bf   : > { %2076 = vadd.xlane.f32.xlu0 %v2075_v4  ;;  %v2676_v4 = vsel %vm2116_vm4, %v2484_v61, 0 }
 0x333   : > { %v2059_v6 = vpop.xlane.xlu0 %2058 }
 0x334   : > { %3647 = vrcp.f32 %v2059_v6 }
 0x337   : > { %v2062_v39 = vpop.xlane.xlu1 %2061 }
 0x338   : > { %3649 = vrcp.f32 %v2062_v39 }
 0x33b   : > { %v2065_v40 = vpop.xlane.xlu0 %2064 }
 0x33c   : > { %3651 = vrcp.f32 %v2065_v40 }
 0x33e   : > { %v3648_v8 = vpop.eup %3647 }
 0x33f   : > { %v2082_v11 = vmul.f32 %v3648_v8, %v3632_v41  ;;  %v2068_v12 = vpop.xlane.xlu1 %2067 }
 0x340   : > { %3653 = vrcp.f32 %v2068_v12 }
 0x341   : > { %v2097_v13 = vpack.c.bf16 %v2082_v11, %v2082_v11 }
 0x342   : > { %v3650_v14 = vpop.eup %3649 }
 0x343   : > { %v2084_v19 = vmul.f32 %v3650_v14, %v3634_v1  ;;  %v2074_v20 = vpop.xlane.xlu1 %2073  ;;  %3481 = vmatmul.mubr.msk.bf16.vlgmr.msra.gmra.mrb[64].mxu0 %vm1632_vm3, %v2097_v13  ;;  %v2485_v13 = vld [vmem:[%s3813_s13 + $0xc] sm:$0xf] }
 0x344   : > { %3655 = vrcp.f32 %v2074_v20  ;;  %3491 = vmatpush3.bf16.msra.mxu0 %v2210_v15  ;;  %v2071_v21 = vpop.xlane.xlu0 %2070  ;;  %3492 = vmatprep.mubr.msk.bf16.mxu0 %vm3730_vm1, %v3729_v3 }
 0x345   : > { %3657 = vrcp.f32 %v2071_v21  ;;  %v2098_v5 = vpack.c.bf16 %v2084_v19, %v2084_v19  ;;  %3502 = vmatprep.subr.bf16.mxu0 %v3729_v3  ;;  %v2765_v19 = vsel %vm2116_vm4, %v2485_v13, 0 }
 0x346   : > { %v3652_v22 = vpop.eup %3651 }
 0x347   : > { %v2086_v24 = vmul.f32 %v3652_v22, %v3636_v48  ;;  %3487 = vmatmul.mubr.msk.bf16.vlgmr.msra.gmra.mrb[64].mxu1 %vm1632_vm3, %v2098_v5  ;;  %v2498_v48 = vsel %vm2116_vm4, %v2482_v47, 0 }
 0x348   : > { %3497 = vmatpush3.bf16.msra.mxu1 %v2256_v23  ;;  %3498 = vmatprep.mubr.msk.bf16.mxu1 %vm3730_vm1, %v3729_v3 }
 0x349   : > { %v2099_v25 = vpack.c.bf16 %v2086_v24, %v2086_v24  ;;  %3508 = vmatprep.subr.bf16.mxu1 %v3729_v3 }
 0x34a   : > { %v3654_v26 = vpop.eup %3653 }
 0x34b   : > { %v2088_v54 = vmul.f32 %v3654_v26, %v3638_v52  ;;  %v2080_v30 = vpop.xlane.xlu1 %2079  ;;  %3493 = vmatmul.mubr.msk.bf16.vlgmr.msra.gmra.mrb[68].mxu0 %vm1632_vm3, %v2099_v25 }
 0x34c   : > { %3659 = vrcp.f32 %v2080_v30  ;;  %3503 = vmatpush3.bf16.msra.mxu0 %v2302_v27  ;;  %v2077_v16 = vpop.xlane.xlu0 %2076  ;;  %3504 = vmatprep.mubr.msk.bf16.mxu0 %vm3730_vm1, %v3729_v3 }
 0x34d   : > { %3661 = vrcp.f32 %v2077_v16  ;;  %v2100_v33 = vpack.c.bf16 %v2088_v54, %v2088_v54  ;;  %3514 = vmatprep.subr.bf16.mxu0 %v3729_v3 }
 0x34e   : > { %v3656_v34 = vpop.eup %3655 }
 0x34f   : > { %v3658_v35 = vpop.eup %3657  ;;  %3499 = vmatmul.mubr.msk.bf16.vlgmr.msra.gmra.mrb[68].mxu1 %vm1632_vm3, %v2100_v33  ;;  %v2092_v41 = vmul.f32 %v3656_v34, %v4143_v58 }
 0x350   : > { %v2090_v37 = vmul.f32 %v3658_v35, %v4145_v59  ;;  %3509 = vmatpush3.bf16.msra.mxu1 %v2348_v36  ;;  %3510 = vmatprep.mubr.msk.bf16.mxu1 %vm3730_vm1, %v3729_v3 }
 0x351   : > { %3520 = vmatprep.subr.bf16.mxu1 %v3729_v3  ;;  %v2102_v28 = vpack.c.bf16 %v2092_v41, %v2092_v41 }
 0x352   : > { %v2101_v42 = vpack.c.bf16 %v2090_v37, %v2090_v37 }
 0x354   : > { %3505 = vmatmul.mubr.msk.bf16.vlgmr.msra.gmra.mrb[72].mxu0 %vm1632_vm3, %v2101_v42 }
 0x355   : > { %3515 = vmatpush3.bf16.msra.mxu0 %v2394_v44  ;;  %3516 = vmatprep.mubr.msk.bf16.mxu0 %vm3730_vm1, %v3729_v3 }
 0x356   : > { %v3660_v45 = vpop.eup %3659  ;;  %3526 = vmatprep.subr.bf16.mxu0 %v3729_v3 }
 0x357   : > { %v3662_v38 = vpop.eup %3661  ;;  %3511 = vmatmul.mubr.msk.bf16.vlgmr.msra.gmra.mrb[72].mxu1 %vm1632_vm3, %v2102_v28  ;;  %v2096_v1 = vmul.f32 %v3660_v45, %v4151_v63 }
 0x358   : > { %v2094_v29 = vmul.f32 %v3662_v38, %v4153_v2  ;;  %3521 = vmatpush3.bf16.msra.mxu1 %v2440_v0  ;;  %3522 = vmatprep.mubr.msk.bf16.mxu1 %vm3730_vm1, %v3729_v3 }
 0x359   : > { %3532 = vmatprep.subr.bf16.mxu1 %v3729_v3  ;;  %v2104_v46 = vpack.c.bf16 %v2096_v1, %v2096_v1 }
 0x35a   : > { %v2103_v9 = vpack.c.bf16 %v2094_v29, %v2094_v29 }
 0x35c   : > { %3517 = vmatmul.mubr.msk.bf16.vlgmr.msra.gmra.mrb[76].mxu0 %vm1632_vm3, %v2103_v9 }
 0x35d   : > { %3528 = vmatprep.mubr.msk.bf16.mxu0 %vm3730_vm1, %v3729_v3  ;;  %3527 = vmatpush3.bf16.msra.mxu0 %v2498_v48 }
 0x35e   : > { %3538 = vmatprep.subr.bf16.mxu0 %v3729_v3 }
 0x35f   : > { %3523 = vmatmul.mubr.msk.bf16.vlgmr.msra.gmra.mrb[76].mxu1 %vm1632_vm3, %v2104_v46 }
 0x360   : > { %3534 = vmatprep.mubr.msk.bf16.mxu1 %vm3730_vm1, %v3729_v3  ;;  %3533 = vmatpush3.bf16.msra.mxu1 %v2498_v48 }
 0x361   : > { %3544 = vmatprep.subr.bf16.mxu1 %v3729_v3 }
 0x416   : > { %v2154_v50 = vpop.f32.mrb[64].mxu0 }
 0x417   : > { %v2486_v31 = vpack.c.bf16 %v2154_v50, %v2154_v50  ;;  %v3482_v51 = vpop.f32.mrb[65].mxu0 }
 0x418   : > { %v2157_v52 = vpop.f32.mrb[66].mxu0 }
 0x419   : > { %v3483_v55 = vpop.f32.mrb[67].mxu0  ;;  %3529 = vmatmul.mubr.msk.bf16.vlgmr.msra.gmra.mrb[80].mxu0 %vm1632_vm3, %v2486_v31 }
 0x41a   : > { %v2200_v56 = vpop.f32.mrb[64].mxu1  ;;  %3539 = vmatpush3.bf16.msra.mxu0 %v2587_v32  ;;  %3540 = vmatprep.mubr.msk.bf16.mxu0 %vm3730_vm1, %v3729_v3 }
 0x41b   : > { %v2487_v57 = vpack.c.bf16 %v2200_v56, %v2200_v56  ;;  %v3488_v58 = vpop.f32.mrb[65].mxu1  ;;  %3550 = vmatprep.subr.bf16.mxu0 %v3729_v3 }
 0x41c   : > { %v2203_v59 = vpop.f32.mrb[66].mxu1 }
 0x41d   : > { %v3489_v62 = vpop.f32.mrb[67].mxu1  ;;  %3535 = vmatmul.mubr.msk.bf16.vlgmr.msra.gmra.mrb[80].mxu1 %vm1632_vm3, %v2487_v57 }
 0x41e   : > { %v2246_v63 = vpop.f32.mrb[68].mxu0  ;;  %3545 = vmatpush3.bf16.msra.mxu1 %v2587_v32  ;;  %3546 = vmatprep.mubr.msk.bf16.mxu1 %vm3730_vm1, %v3729_v3 }
 0x41f   : > { %v2488_v2 = vpack.c.bf16 %v2246_v63, %v2246_v63  ;;  %v3494_v60 = vpop.f32.mrb[69].mxu0  ;;  %3556 = vmatprep.subr.bf16.mxu1 %v3729_v3 }
 0x420   : > { %v2249_v6 = vpop.f32.mrb[70].mxu0 }
 0x421   : > { %v3495_v39 = vpop.f32.mrb[71].mxu0  ;;  %3541 = vmatmul.mubr.msk.bf16.vlgmr.msra.gmra.mrb[84].mxu0 %vm1632_vm3, %v2488_v2 }
 0x422   : > { %v2292_v40 = vpop.f32.mrb[68].mxu1  ;;  %3551 = vmatpush3.bf16.msra.mxu0 %v2676_v4  ;;  %3552 = vmatprep.mubr.msk.bf16.mxu0 %vm3730_vm1, %v3729_v3  ;;  %v3109_v39 = vld [vmem:[%s305_s19] ss:$0 sm:$0xff] }
 0x423   : > { %v2489_v8 = vpack.c.bf16 %v2292_v40, %v2292_v40  ;;  %v3500_v10 = vpop.f32.mrb[69].mxu1  ;;  %3562 = vmatprep.subr.bf16.mxu0 %v3729_v3 }
 0x424   : > { %v2295_v11 = vpop.f32.mrb[70].mxu1 }
 0x425   : > { %v3501_v12 = vpop.f32.mrb[71].mxu1  ;;  %3547 = vmatmul.mubr.msk.bf16.vlgmr.msra.gmra.mrb[84].mxu1 %vm1632_vm3, %v2489_v8 }
 0x426   : > { %3557 = vmatpush3.bf16.msra.mxu1 %v2676_v4  ;;  %3558 = vmatprep.mubr.msk.bf16.mxu1 %vm3730_vm1, %v3729_v3 }
 0x427   : > { %v2338_v14 = vpop.f32.mrb[72].mxu0  ;;  %3568 = vmatprep.subr.bf16.mxu1 %v3729_v3 }
 0x428   : > { %v2490_v15 = vpack.c.bf16 %v2338_v14, %v2338_v14  ;;  %v3506_v17 = vpop.f32.mrb[73].mxu0 }
 0x429   : > { %v2341_v20 = vpop.f32.mrb[74].mxu0 }
 0x42a   : > { %v3507_v21 = vpop.f32.mrb[75].mxu0  ;;  %3553 = vmatmul.mubr.msk.bf16.vlgmr.msra.gmra.mrb[88].mxu0 %vm1632_vm3, %v2490_v15  ;;  %v2384_v5 = vpop.f32.mrb[72].mxu1 }
 0x42b   : > { %v2491_v22 = vpack.c.bf16 %v2384_v5, %v2384_v5  ;;  %v3512_v23 = vpop.f32.mrb[73].mxu1  ;;  %3563 = vmatpush3.bf16.msra.mxu0 %v2765_v19  ;;  %3564 = vmatprep.mubr.msk.bf16.mxu0 %vm3730_vm1, %v3729_v3 }
 0x42c   : > { %v2387_v7 = vpop.f32.mrb[74].mxu1 }
 0x42d   : > { %v3513_v24 = vpop.f32.mrb[75].mxu1  ;;  %3559 = vmatmul.mubr.msk.bf16.vlgmr.msra.gmra.mrb[88].mxu1 %vm1632_vm3, %v2491_v22 }
 0x42e   : > { %3569 = vmatpush3.bf16.msra.mxu1 %v2765_v19  ;;  %3570 = vmatprep.mubr.msk.bf16.mxu1 %vm3730_vm1, %v3729_v3 }
 0x42f   : > { %v2430_v25 = vpop.f32.mrb[76].mxu0 }
 0x430   : > { %v2492_v26 = vpack.c.bf16 %v2430_v25, %v2430_v25  ;;  %v3518_v27 = vpop.f32.mrb[77].mxu0 }
 0x431   : > { %v2433_v53 = vpop.f32.mrb[78].mxu0 }
 0x432   : > { %v3519_v54 = vpop.f32.mrb[79].mxu0  ;;  %3565 = vmatmul.mubr.msk.bf16.vlgmr.msra.gmra.mrb[92].mxu0 %vm1632_vm3, %v2492_v26  ;;  %v2476_v30 = vpop.f32.mrb[76].mxu1 }
 0x433   : > { %v2493_v16 = vpack.c.bf16 %v2476_v30, %v2476_v30  ;;  %v3524_v33 = vpop.f32.mrb[77].mxu1 }
 0x434   : > { %v2479_v34 = vpop.f32.mrb[78].mxu1 }
 0x435   : > { %v3525_v35 = vpop.f32.mrb[79].mxu1  ;;  %3571 = vmatmul.mubr.msk.bf16.vlgmr.msra.gmra.mrb[92].mxu1 %vm1632_vm3, %v2493_v16 }
 0x4ec   : > { %v2534_v36 = vpop.f32.mrb[80].mxu0 }
 0x4ed   : > { %v3530_v18 = vpop.f32.mrb[81].mxu0  ;;  %v2850_v45 = vsel %vm517_vm2, %v2534_v36, 0.0 }
 0x4ee   : > { %v2537_v37 = vpop.f32.mrb[82].mxu0 }
 0x4ef   : > { %v3531_v41 = vpop.f32.mrb[83].mxu0 }
 0x4f0   : > { %v2577_v42 = vpop.f32.mrb[80].mxu1 }
 0x4f1   : > { %v3536_v3 = vpop.f32.mrb[81].mxu1  ;;  %v2857_v47 = vsel %vm517_vm2, %v2577_v42, 0.0 }
 0x4f2   : > { %v2580_v43 = vpop.f32.mrb[82].mxu1 }
 0x4f3   : > { %v3537_v44 = vpop.f32.mrb[83].mxu1 }
 0x4f4   : > { %v2623_v28 = vpop.f32.mrb[84].mxu0 }
 0x4f5   : > { %v2851_v38 = vsel %vm517_vm2, %v2623_v28, 0.0  ;;  %v3542_v0 = vpop.f32.mrb[85].mxu0 }
 0x4f6   : > { %v2852_v29 = vadd.f32 %v2851_v38, %v2850_v45  ;;  %v2626_v1 = vpop.f32.mrb[86].mxu0 }
 0x4f7   : > { %v3543_v9 = vpop.f32.mrb[87].mxu0  ;;  %v2917_v1 = vstv (!%p3110_p2), %s2915_s28 }
 0x4f8   : > { %v2666_v46 = vpop.f32.mrb[84].mxu1 }
 0x4f9   : > { %v2858_v48 = vsel %vm517_vm2, %v2666_v46, 0.0  ;;  %v3548_v49 = vpop.f32.mrb[85].mxu1 }
 0x4fa   : > { %v2859_v50 = vadd.f32 %v2858_v48, %v2857_v47  ;;  %v2669_v31 = vpop.f32.mrb[86].mxu1  ;;  %v2926_v47 = vstv (!%p3110_p2), %s3111_s29 }
 0x4fb   : > { %v3549_v51 = vpop.f32.mrb[87].mxu1 }
 0x4fd   : > { %v2712_v32 = vpop.f32.mrb[88].mxu0 }
 0x4fe   : > { %v2853_v52 = vsel %vm517_vm2, %v2712_v32, 0.0  ;;  %v3554_v55 = vpop.f32.mrb[89].mxu0 }
 0x4ff   : > { %v2854_v56 = vadd.f32 %v2853_v52, %v2852_v29  ;;  %v2715_v57 = vpop.f32.mrb[90].mxu0 }
 0x500   : > { %v3555_v58 = vpop.f32.mrb[91].mxu0  ;;  %v2755_v59 = vpop.f32.mrb[88].mxu1 }
 0x501   : > { %v2860_v61 = vsel %vm517_vm2, %v2755_v59, 0.0  ;;  %v3560_v62 = vpop.f32.mrb[89].mxu1 }
 0x502   : > { %v2861_v63 = vadd.f32 %v2860_v61, %v2859_v50  ;;  %v2758_v2 = vpop.f32.mrb[90].mxu1 }
 0x503   : > { %v3561_v60 = vpop.f32.mrb[91].mxu1 }
 0x505   : > { %v2801_v4 = vpop.f32.mrb[92].mxu0 }
 0x506   : > { %v2855_v6 = vsel %vm517_vm2, %v2801_v4, 0.0  ;;  %v3566_v40 = vpop.f32.mrb[93].mxu0 }
 0x507   : > { %v2856_v8 = vadd.f32 %v2855_v6, %v2854_v56  ;;  %v2804_v10 = vpop.f32.mrb[94].mxu0 }
 0x508   : > { %v3567_v11 = vpop.f32.mrb[95].mxu0  ;;  %v2844_v12 = vpop.f32.mrb[92].mxu1  ;;  %2878 = sbr.rel (%p3110_p2) target bundleno = 1622 (0x656), region = 56 }
 0x509   : > { %v2871_v13 = vadd.f32 %v3109_v39, %v2856_v8  ;;  %v2862_v14 = vsel %vm517_vm2, %v2844_v12, 0.0  ;;  %v3572_v15 = vpop.f32.mrb[93].mxu1 }
 0x50a   : > { %v2863_v17 = vadd.f32 %v2862_v14, %v2861_v63  ;;  %v2847_v19 = vpop.f32.mrb[94].mxu1 }
 0x50b   : > { %2873 = vst.msk [vmem:[#allocation2] sm:$0xff] %vm517_vm2, %v2871_v13  ;;  %v3573_v20 = vpop.f32.mrb[95].mxu1  ;;  %v2879_v5 = vsel (!%p3110_p2), %vm517_vm2, %v2871_v13, 0.0 }
 0x50c   : > { %v2872_v21 = vadd.f32 %v3109_v39, %v2863_v17  ;;  %2880 = vadd.xlane.f32.xlu0 (!%p3110_p2), %v2879_v5 }
 0x50e   : > { %2874 = vst.msk [vmem:[#allocation2 + $0x8] sm:$0xff] %vm517_vm2, %v2872_v21  ;;  %v2882_v22 = vsel (!%p3110_p2), %vm517_vm2, %v2872_v21, 0.0 }
 0x510   : > { %2883 = vadd.xlane.f32.xlu0 %v2882_v22 }
 0x599   : > { %v2881_v23 = vpop.xlane.xlu0 %2880 }
 0x59a   : > { %v2886_v7 = vmul.f32 0.03125, %v2881_v23 }
 0x59c   : > { %v2888_v24 = vsub.f32 %v2871_v13, %v2886_v7 }
 0x59d   : > { %v2884_v25 = vpop.xlane.xlu0 %2883 }
 0x59e   : > { %v2887_v26 = vmul.f32 0.03125, %v2884_v25  ;;  %v2890_v27 = vmul.f32 %v2888_v24, %v2888_v24  ;;  %v2918_v9 = vmul.f32 %v2917_v1, %v2888_v24 }
 0x5a0   : > { %v2889_v53 = vsub.f32 %v2872_v21, %v2887_v26  ;;  %v2892_v54 = vsel %vm517_vm2, %v2890_v27, 0.0 }
 0x5a1   : > { %2893 = vadd.xlane.f32.xlu1 %v2892_v54 }
 0x5a2   : > { %v2891_v30 = vmul.f32 %v2889_v53, %v2889_v53  ;;  %v2919_v49 = vmul.f32 %v2917_v1, %v2889_v53 }
 0x5a4   : > { %v2895_v16 = vsel %vm517_vm2, %v2891_v30, 0.0 }
 0x5a5   : > { %2896 = vadd.xlane.f32.xlu1 %v2895_v16 }
 0x62e   : > { %v2894_v33 = vpop.xlane.xlu1 %2893 }
 0x62f   : > { %v2899_v34 = vmul.f32 0.032258064, %v2894_v33 }
 0x631   : > { %3663 = vrsqrt.f32 %v2899_v34  ;;  %vm2903_vm5 = vcmp.eq.f32.partialorder %v2899_v34, inf  ;;  %v2906_v41 = vand.u32 2147483648, %v2899_v34  ;;  %vm2905_vm6 = vcmp.eq.f32.partialorder %v2899_v34, 0.0 }
 0x632   : > { %v2897_v35 = vpop.xlane.xlu1 %2896 }
 0x633   : > { %v2900_v36 = vmul.f32 0.032258064, %v2897_v35 }
 0x635   : > { %3665 = vrsqrt.f32 %v2900_v36  ;;  %vm2910_vm7 = vcmp.eq.f32.partialorder %v2900_v36, inf  ;;  %v2913_v45 = vand.u32 2147483648, %v2900_v36  ;;  %vm2912_vm8 = vcmp.eq.f32.partialorder %v2900_v36, 0.0 }
 0x63b   : > { %v3664_v18 = vpop.eup %3663 }
 0x63c   : > { %v2902_v37 = vmul.f32 %v3664_v18, %v2899_v34 }
 0x63e   : > { %v2904_v42 = vsel %vm2903_vm5, %v2899_v34, %v2902_v37 }
 0x63f   : > { %v3666_v3 = vpop.eup %3665  ;;  %v2907_v43 = vsel %vm2905_vm6, %v2906_v41, %v2904_v42 }
 0x640   : > { %v2920_v44 = vadd.f32 1e-06, %v2907_v43  ;;  %v2909_v28 = vmul.f32 %v3666_v3, %v2900_v36 }
 0x642   : > { %3667 = vrcp.f32 %v2920_v44  ;;  %v2911_v38 = vsel %vm2910_vm7, %v2900_v36, %v2909_v28 }
 0x643   : > { %v2914_v0 = vsel %vm2912_vm8, %v2913_v45, %v2911_v38 }
 0x644   : > { %v2921_v29 = vadd.f32 1e-06, %v2914_v0 }
 0x646   : > { %3669 = vrcp.f32 %v2921_v29 }
 0x64c   : > { %v3668_v46 = vpop.eup %3667 }
 0x64d   : > { %v2923_v48 = vmul.f32 %v3668_v46, %v2918_v9 }
 0x64f   : > { %v2927_v50 = vadd.f32 %v2926_v47, %v2923_v48 }
 0x650   : > { %v3670_v31 = vpop.eup %3669 }
 0x651   : > { %2929 = vst.msk [vmem:[#allocation6] sm:$0xff] %vm517_vm2, %v2927_v50  ;;  %v2925_v51 = vmul.f32 %v3670_v31, %v2919_v49 }
 0x653   : > { %v2928_v32 = vadd.f32 %v2926_v47, %v2925_v51 }
 0x655   : > { %2930 = vst.msk [vmem:[#allocation6 + $0x8] sm:$0xff] %vm517_vm2, %v2928_v32 }
 0x656 PF: > { %p3589_p3 = scmp.eq.s32.totalorder %s3776_s22, 1  ;;  %s3732_s30 = smov [#allocation6]  }
 0x657   : > { %s2937_s7 = sshll.u32 %s3732_s30, 4  ;;  %s2938_s7 = int_to_ptr.vmem [resolvable:$true] %s2937_s7 }
 0x658   : > { %s3686_s8 = scalar_lea.vmem %s2938_s7, 256  ;;  %p3693_p7 = scmp.lt.s32.totalorder %s2938_s7, %s2938_s7 }
 0x659   : > { %p3687_p4 = scmp.ne.s32.totalorder %s2938_s7, %s3686_s8  ;;  %p3694_p8 = scmp.lt.s32.totalorder %s3686_s8, %s3686_s8 }
 0x65b   : > { %p3688_p5 = pnand %p3687_p4, %p3589_p3  ;;  %p3695_p9 = por %p3694_p8, %p3693_p7 }
 0x65d   : > { %p3689_p6 = pneg %p3688_p5 }
 0x65f   : > { %p3696_p10 = pnand %p3695_p9, %p3689_p6 }
 0x661   : > { %3699 = shalt.err (!%p3696_p10)
}
 0x662   : > { %s3700_s11 = scalar_lea.hbm %s4299_s6, 256 }
 0x663   : > { %p3701_p11 = scmp.ne.s32.totalorder %s4299_s6, %s3700_s11  ;;  %p3706_p0 = scmp.lt.u32.totalorder %s3700_s11, %s4299_s6 }
 0x665   : > { %p3702_p12 = pnand %p3701_p11, %p3589_p3 }
 0x667   : > { %p3703_p13 = pneg %p3702_p12 }
 0x669   : > { %p3708_p1 = pnand %p3706_p0, %p3703_p13 }
 0x66b   : > { %3711 = shalt.err (!%p3708_p1)
}
 0x66c   : > { %s3733_s16 = smov 128   ;;  %s3734_s17 = smov 8  }
 0x66d   : > { %3580 = dma.vmem_to_hbm [thread:$0]  (%p3589_p3), %s2938_s7, 256, %s4299_s6, [#allocation4], %s3733_s16, %s3733_s16, %s3734_s17  }
 0x66e   : > { %3721 = dma.done.wait (%p3589_p3), [#allocation4], 256  }
 0x66f   : > { %3723 = vsyncadd (%p3589_p3), [#allocation4], 4294967040 }
 0x670 PF: > { %s18_s21 = sadd.s32 1, %s3726_s21  }
 0x671   : > { %p15_p2 = scmp.ge.s32.totalorder %s18_s21, 4  }
 0x673   :  { %17 = sbr.rel (!%p15_p2) target bundleno = 2 (0x2), region = 93 }
 0x67a   :  { %2953 = vsyncpa [#allocation4], 1 }
 0x67b   :  { %2955 = vsyncpa [#allocation4 + $0x1], 1 }
 0x67c   :  { %2956 = vsyncpa [#allocation5], 1 }
 0x67d   :  { %2958 = vsyncpa [#allocation5 + $0x1], 1 }

</bundles_post_ra>
